<compile_context>
chip_gen: v7x
topology: tpu7x:2x2x1
jax: 0.10.0
libtpu: 0.0.40
codegen_flags: <defaults>
</compile_context>

<pallas_src>
import functools

import numpy as np
import jax
import jax.numpy as jnp
from jax import lax
from jax.experimental import pallas as pl
from jax.experimental.pallas import tpu as pltpu


# -----------------------------------------------------------------------------
# Pallas kernel: one batch element per grid step.
# -----------------------------------------------------------------------------
def _extract_concept_kernel(
    length_ref,                 # SMEM [B] int32 (scalar prefetch)
    x_ref,                      # VMEM (1, S, H)  f32 embedded tokens for batch b
    lab_ref,                    # VMEM (1, S, 2)  int32 [table_label, column_label]
    wq_ref, bq_ref,             # (nh, H, hd) bf16 / (nh, 1, hd) f32
    wk_ref, bk_ref,
    wv_ref, bv_ref,
    wo_ref, bo_ref,             # (nh, hd, H) bf16 / (1, H) f32
    ln1_g_ref, ln1_b_ref,
    w1_ref, b1_ref, w2_ref, b2_ref,
    ln2_g_ref, ln2_b_ref,
    wtc_ref, btc_ref,           # fused classifier: (H, 2L) bf16 / (1, 2L) f32
    logits_ref,                 # VMEM (1, S, 2L)  out
    loss_ref,                   # VMEM (1, 1, 1)   out (per-batch CE sum)
    *, num_heads, label_nums, eps=1e-12):
  b = pl.program_id(0)

  x = x_ref[0]                  # (S, H) f32
  S, H = x.shape
  nh = num_heads
  hd = H // nh
  L = label_nums
  scale = 1.0 / float(hd) ** 0.5

  x_bf = x.astype(jnp.bfloat16)
  x3 = jnp.broadcast_to(x_bf, (nh, S, H))         # batched LHS for all heads (done once)

  def head_proj(w_r, b_r):
    return jnp.einsum('nsh,nhd->nsd', x3, w_r[...],
                      preferred_element_type=jnp.float32) + b_r[...]

  # --- self-attention (batched over heads) ----------------------------------
  q3 = (head_proj(wq_ref, bq_ref) * scale).astype(jnp.bfloat16)   # scale folded into q
  k3 = head_proj(wk_ref, bk_ref).astype(jnp.bfloat16)
  v3 = head_proj(wv_ref, bv_ref).astype(jnp.bfloat16)

  # length_to_mask -> additive key mask, built once per grid step.
  kmask = jnp.where(
      lax.broadcasted_iota(jnp.int32, (1, 1, S), 2) < length_ref[b],
      jnp.float32(0.0), jnp.float32(-1e9))

  s = jnp.einsum('nqd,nkd->nqk', q3, k3,
                 preferred_element_type=jnp.float32) + kmask      # (nh, S, S)
  s = s - jnp.max(s, axis=-1, keepdims=True)
  p = jnp.exp(s)
  p = p / jnp.sum(p, axis=-1, keepdims=True)

  ctx = jnp.einsum('nqk,nkd->nqd', p.astype(jnp.bfloat16), v3,
                   preferred_element_type=jnp.float32)            # (nh, S, hd)
  # per-head output projection accumulated into one (S, H) tensor (no concat).
  attn = jnp.sum(
      jnp.einsum('nqd,ndh->nqh', ctx.astype(jnp.bfloat16), wo_ref[...],
                 preferred_element_type=jnp.float32),
      axis=0) + bo_ref[...]                                       # (S, H)

  def layer_norm(v, g_r, b_r):
    mu = jnp.mean(v, axis=-1, keepdims=True)
    var = jnp.mean((v - mu) ** 2, axis=-1, keepdims=True)
    return (v - mu) * lax.rsqrt(var + eps) * g_r[...] + b_r[...]

  x1 = layer_norm(x + attn, ln1_g_ref, ln1_b_ref)

  # --- feed-forward ----------------------------------------------------------
  ffn = jnp.dot(x1.astype(jnp.bfloat16), w1_ref[...],
                preferred_element_type=jnp.float32) + b1_ref[...]
  ffn = jax.nn.gelu(ffn, approximate=True)
  ffn = jnp.dot(ffn.astype(jnp.bfloat16), w2_ref[...],
                preferred_element_type=jnp.float32) + b2_ref[...]
  seq_out = layer_norm(x1 + ffn, ln2_g_ref, ln2_b_ref)
  # TODO(synk): nn.Dropout(p) is treated as identity (deterministic / eval mode).

  # --- fused classifier heads (one matmul, one contiguous store) -------------
  comb = jnp.dot(seq_out.astype(jnp.bfloat16), wtc_ref[...],
                 preferred_element_type=jnp.float32) + btc_ref[...]   # (S, 2L)
  logits_ref[0] = comb

  # --- cross-entropy (per-batch summed; mean taken in the wrapper) -----------
  labels = lab_ref[0]           # (S, 2) int32

  def ce_sum(lg, lab_col):      # lg (S, L), lab_col (S, 1)
    m = jnp.max(lg, axis=-1, keepdims=True)
    lse = m + jnp.log(jnp.sum(jnp.exp(lg - m), axis=-1, keepdims=True))
    oh = (lax.broadcasted_iota(jnp.int32, lg.shape, 1) == lab_col).astype(jnp.float32)
    picked = jnp.sum(lg * oh, axis=-1, keepdims=True)
    return jnp.sum(lse - picked, axis=0, keepdims=True)           # (1, 1)

  loss_ref[0] = (ce_sum(comb[:, :L], labels[:, 0:1]) +
                 ce_sum(comb[:, L:], labels[:, 1:2]))


# -----------------------------------------------------------------------------
# Wrapper (glue: embedding gather, weight re-layout, BlockSpecs, pallas_call)
# -----------------------------------------------------------------------------
def extract_concept_forward(sent, table_label, column_label, length, params,
                            *, num_heads):
  B, S = sent.shape
  H = params["word_emb"].shape[1]
  L = params["wt"].shape[1]
  nh = num_heads
  hd = H // nh
  bf = jnp.bfloat16

  # glue: embedding lookup (word + position)
  x_emb = (params["word_emb"][sent] + params["pos_emb"][None, :S, :]).astype(jnp.float32)
  # glue: int32 labels packed as (B, S, 2) -> no one-hot HBM traffic
  labels = jnp.stack([table_label, column_label], axis=-1).astype(jnp.int32)

  # head-split / bf16 / fused weight layouts (prepared once, outside the kernel)
  wq3 = params["wq"].reshape(H, nh, hd).transpose(1, 0, 2).astype(bf)
  wk3 = params["wk"].reshape(H, nh, hd).transpose(1, 0, 2).astype(bf)
  wv3 = params["wv"].reshape(H, nh, hd).transpose(1, 0, 2).astype(bf)
  bq3 = params["bq"].reshape(1, nh, hd).transpose(1, 0, 2)
  bk3 = params["bk"].reshape(1, nh, hd).transpose(1, 0, 2)
  bv3 = params["bv"].reshape(1, nh, hd).transpose(1, 0, 2)
  wo3 = params["wo"].reshape(nh, hd, H).astype(bf)
  wtc = jnp.concatenate([params["wt"], params["wc"]], axis=1).astype(bf)   # (H, 2L)
  btc = jnp.concatenate([params["bt"], params["bc"]], axis=1)              # (1, 2L)

  weights = [
      wq3, bq3, wk3, bk3, wv3, bv3, wo3, params["bo"],
      params["ln1_g"], params["ln1_b"],
      params["w1"].astype(bf), params["b1"],
      params["w2"].astype(bf), params["b2"],
      params["ln2_g"], params["ln2_b"],
      wtc, btc,
  ]

  def const_spec(arr):
    shp = tuple(arr.shape)
    return pl.BlockSpec(shp, lambda b, ln: (0,) * len(shp))

  in_specs = [
      pl.BlockSpec((1, S, H), lambda b, ln: (b, 0, 0)),     # x_emb
      pl.BlockSpec((1, S, 2), lambda b, ln: (b, 0, 0)),     # labels
  ] + [const_spec(w) for w in weights]

  grid_spec = pltpu.PrefetchScalarGridSpec(
      num_scalar_prefetch=1,
      grid=(B,),
      in_specs=in_specs,
      out_specs=[
          pl.BlockSpec((1, S, 2 * L), lambda b, ln: (b, 0, 0)),
          pl.BlockSpec((1, 1, 1), lambda b, ln: (b, 0, 0)),
      ],
  )

  kernel = functools.partial(_extract_concept_kernel, num_heads=nh, label_nums=L)
  comb_logits, per_batch_loss = pl.pallas_call(
      kernel,
      grid_spec=grid_spec,
      out_shape=(jax.ShapeDtypeStruct((B, S, 2 * L), jnp.float32),
                 jax.ShapeDtypeStruct((B, 1, 1), jnp.float32)),
      compiler_params=pltpu.CompilerParams(
          dimension_semantics=("parallel",),          # per-batch outputs -> megacore OK
          vmem_limit_bytes=48 * 1024 * 1024),
  )(length.astype(jnp.int32), x_emb, labels, *weights)

  # [B, S, 2L] -> torch.stack([table, column]).transpose(0, 1) = [B, 2, S, L]
  logits = comb_logits.reshape(B, S, 2, L).transpose(0, 2, 1, 3)
  # torch CrossEntropyLoss(mean) for each head, summed.
  loss = jnp.sum(per_batch_loss) / jnp.float32(B * S)
  return loss, logits


# -----------------------------------------------------------------------------
# Pure-JAX reference (same simplified encoder, same bf16 cast points)
# -----------------------------------------------------------------------------
def reference_forward(sent, table_label, column_label, length, params, *, num_heads):
  B, S = sent.shape
  H = params["word_emb"].shape[1]
  L = params["wt"].shape[1]
  nh = num_heads
  hd = H // nh
  eps = 1e-12
  bf = jnp.bfloat16
  f32 = jnp.float32

  x = (params["word_emb"][sent] + params["pos_emb"][None, :S, :]).astype(f32)
  x_bf = x.astype(bf)

  def dense(v_bf, w, bias):
    return jnp.dot(v_bf, w.astype(bf), preferred_element_type=f32) + bias

  scale = 1.0 / float(hd) ** 0.5
  q = dense(x_bf, params["wq"], params["bq"]) * scale
  k = dense(x_bf, params["wk"], params["bk"])
  v = dense(x_bf, params["wv"], params["bv"])

  def split_heads(t):
    return t.astype(bf).reshape(B, S, nh, hd).transpose(0, 2, 1, 3)   # (B,nh,S,hd)

  q4, k4, v4 = split_heads(q), split_heads(k), split_heads(v)
  kmask = jnp.where(jnp.arange(S)[None, None, None, :] < length[:, None, None, None],
                    jnp.float32(0.0), jnp.float32(-1e9))
  s = jnp.einsum('bnqd,bnkd->bnqk', q4, k4, preferred_element_type=f32) + kmask
  s = s - jnp.max(s, axis=-1, keepdims=True)
  p = jnp.exp(s)
  p = p / jnp.sum(p, axis=-1, keepdims=True)
  ctx = jnp.einsum('bnqk,bnkd->bnqd', p.astype(bf), v4, preferred_element_type=f32)
  attn = ctx.transpose(0, 2, 1, 3).reshape(B, S, H)
  attn = dense(attn.astype(bf), params["wo"], params["bo"])

  def layer_norm(vv, g, b):
    mu = jnp.mean(vv, axis=-1, keepdims=True)
    var = jnp.mean((vv - mu) ** 2, axis=-1, keepdims=True)
    return (vv - mu) * lax.rsqrt(var + eps) * g + b

  x1 = layer_norm(x + attn, params["ln1_g"], params["ln1_b"])
  ffn = jax.nn.gelu(dense(x1.astype(bf), params["w1"], params["b1"]), approximate=True)
  ffn = dense(ffn.astype(bf), params["w2"], params["b2"])
  seq_out = layer_norm(x1 + ffn, params["ln2_g"], params["ln2_b"])

  t_logits = dense(seq_out.astype(bf), params["wt"], params["bt"])
  c_logits = dense(seq_out.astype(bf), params["wc"], params["bc"])

  def ce_mean(logits, lab):
    oh = jax.nn.one_hot(lab, L, dtype=f32)
    m = jnp.max(logits, axis=-1, keepdims=True)
    lse = m + jnp.log(jnp.sum(jnp.exp(logits - m), axis=-1, keepdims=True))
    picked = jnp.sum(logits * oh, axis=-1, keepdims=True)
    return jnp.mean(lse - picked)

  loss = ce_mean(t_logits, table_label) + ce_mean(c_logits, column_label)
  logits = jnp.stack([t_logits, c_logits], axis=0).transpose(1, 0, 2, 3)
  return loss, logits


# -----------------------------------------------------------------------------
def init_params(key, *, vocab, max_seq, hidden, ffn, label_nums):
  keys = jax.random.split(key, 16)
  n = lambda i, shp: (0.02 * jax.random.normal(keys[i], shp)).astype(jnp.float32)
  zeros2 = lambda d: jnp.zeros((1, d), jnp.float32)
  return {
      "word_emb": n(0, (vocab, hidden)),
      "pos_emb": n(1, (max_seq, hidden)),
      "wq": n(2, (hidden, hidden)), "bq": zeros2(hidden),
      "wk": n(3, (hidden, hidden)), "bk": zeros2(hidden),
      "wv": n(4, (hidden, hidden)), "bv": zeros2(hidden),
      "wo": n(5, (hidden, hidden)), "bo": zeros2(hidden),
      "ln1_g": jnp.ones((1, hidden), jnp.float32), "ln1_b": zeros2(hidden),
      "w1": n(6, (hidden, ffn)), "b1": zeros2(ffn),
      "w2": n(7, (ffn, hidden)), "b2": zeros2(hidden),
      "ln2_g": jnp.ones((1, hidden), jnp.float32), "ln2_b": zeros2(hidden),
      "wt": n(8, (hidden, label_nums)), "bt": zeros2(label_nums),
      "wc": n(9, (hidden, label_nums)), "bc": zeros2(label_nums),
  }


if __name__ == "__main__":
  B, S, H, F, L, VOCAB, NH = 2, 8, 128, 256, 2, 50, 2

  key = jax.random.PRNGKey(0)
  k_p, k_sent, k_tl, k_cl = jax.random.split(key, 4)
  params = init_params(k_p, vocab=VOCAB, max_seq=S, hidden=H, ffn=F, label_nums=L)

  sent = jax.random.randint(k_sent, (B, S), 0, VOCAB, dtype=jnp.int32)
  table_label = jax.random.randint(k_tl, (B, S), 0, L, dtype=jnp.int32)
  column_label = jax.random.randint(k_cl, (B, S), 0, L, dtype=jnp.int32)
  length = jnp.array([S, 5], dtype=jnp.int32)

  loss, logits = extract_concept_forward(
      sent, table_label, column_label, length, params, num_heads=NH)
  loss, logits = jax.block_until_ready((loss, logits))

  ref_loss, ref_logits = reference_forward(
      sent, table_label, column_label, length, params, num_heads=NH)

  np.testing.assert_allclose(np.asarray(logits), np.asarray(ref_logits),
                             rtol=2e-3, atol=2e-3)
  np.testing.assert_allclose(np.asarray(loss), np.asarray(ref_loss),
                             rtol=2e-3, atol=2e-3)
  print("KERNEL_OK")
</pallas_src>

<mosaic_0001>
module attributes {stable_mosaic.version = 11 : i64} {
  func.func @_extract_concept_kernel(%arg0: i32, %arg1: memref<2xi32, #tpu.memory_space<smem>>, %arg2: memref<1x8x128xf32, #tpu.memory_space<vmem>>, %arg3: memref<1x8x2xi32, #tpu.memory_space<vmem>>, %arg4: memref<2x128x64xbf16, #tpu.memory_space<vmem>>, %arg5: memref<2x1x64xf32, #tpu.memory_space<vmem>>, %arg6: memref<2x128x64xbf16, #tpu.memory_space<vmem>>, %arg7: memref<2x1x64xf32, #tpu.memory_space<vmem>>, %arg8: memref<2x128x64xbf16, #tpu.memory_space<vmem>>, %arg9: memref<2x1x64xf32, #tpu.memory_space<vmem>>, %arg10: memref<2x64x128xbf16, #tpu.memory_space<vmem>>, %arg11: memref<1x128xf32, #tpu.memory_space<vmem>>, %arg12: memref<1x128xf32, #tpu.memory_space<vmem>>, %arg13: memref<1x128xf32, #tpu.memory_space<vmem>>, %arg14: memref<128x256xbf16, #tpu.memory_space<vmem>>, %arg15: memref<1x256xf32, #tpu.memory_space<vmem>>, %arg16: memref<256x128xbf16, #tpu.memory_space<vmem>>, %arg17: memref<1x128xf32, #tpu.memory_space<vmem>>, %arg18: memref<1x128xf32, #tpu.memory_space<vmem>>, %arg19: memref<1x128xf32, #tpu.memory_space<vmem>>, %arg20: memref<128x4xbf16, #tpu.memory_space<vmem>>, %arg21: memref<1x4xf32, #tpu.memory_space<vmem>>, %arg22: memref<1x8x4xf32, #tpu.memory_space<vmem>>, %arg23: memref<1x1x1xf32, #tpu.memory_space<vmem>>) attributes {dimension_semantics = [#tpu.dimension_semantics<parallel>], iteration_bounds = array<i64: 2>, scalar_prefetch = 1 : i64, scratch_operands = 0 : i64, tpu.core_type = #tpu.core_type<tc>, window_params = [{transform_indices = @transform_0, window_bounds = array<i64: 1, 8, 128>}, {transform_indices = @transform_1, window_bounds = array<i64: 1, 8, 2>}, {pipeline_mode = #tpu.pipeline_mode<synchronous>, transform_indices = @transform_2, window_bounds = array<i64: 2, 128, 64>}, {pipeline_mode = #tpu.pipeline_mode<synchronous>, transform_indices = @transform_3, window_bounds = array<i64: 2, 1, 64>}, {pipeline_mode = #tpu.pipeline_mode<synchronous>, transform_indices = @transform_4, window_bounds = array<i64: 2, 128, 64>}, {pipeline_mode = #tpu.pipeline_mode<synchronous>, transform_indices = @transform_5, window_bounds = array<i64: 2, 1, 64>}, {pipeline_mode = #tpu.pipeline_mode<synchronous>, transform_indices = @transform_6, window_bounds = array<i64: 2, 128, 64>}, {pipeline_mode = #tpu.pipeline_mode<synchronous>, transform_indices = @transform_7, window_bounds = array<i64: 2, 1, 64>}, {pipeline_mode = #tpu.pipeline_mode<synchronous>, transform_indices = @transform_8, window_bounds = array<i64: 2, 64, 128>}, {pipeline_mode = #tpu.pipeline_mode<synchronous>, transform_indices = @transform_9, window_bounds = array<i64: 1, 128>}, {pipeline_mode = #tpu.pipeline_mode<synchronous>, transform_indices = @transform_10, window_bounds = array<i64: 1, 128>}, {pipeline_mode = #tpu.pipeline_mode<synchronous>, transform_indices = @transform_11, window_bounds = array<i64: 1, 128>}, {pipeline_mode = #tpu.pipeline_mode<synchronous>, transform_indices = @transform_12, window_bounds = array<i64: 128, 256>}, {pipeline_mode = #tpu.pipeline_mode<synchronous>, transform_indices = @transform_13, window_bounds = array<i64: 1, 256>}, {pipeline_mode = #tpu.pipeline_mode<synchronous>, transform_indices = @transform_14, window_bounds = array<i64: 256, 128>}, {pipeline_mode = #tpu.pipeline_mode<synchronous>, transform_indices = @transform_15, window_bounds = array<i64: 1, 128>}, {pipeline_mode = #tpu.pipeline_mode<synchronous>, transform_indices = @transform_16, window_bounds = array<i64: 1, 128>}, {pipeline_mode = #tpu.pipeline_mode<synchronous>, transform_indices = @transform_17, window_bounds = array<i64: 1, 128>}, {pipeline_mode = #tpu.pipeline_mode<synchronous>, transform_indices = @transform_18, window_bounds = array<i64: 128, 4>}, {pipeline_mode = #tpu.pipeline_mode<synchronous>, transform_indices = @transform_19, window_bounds = array<i64: 1, 4>}, {transform_indices = @transform_20, window_bounds = array<i64: 1, 8, 4>}, {transform_indices = @transform_21, window_bounds = array<i64: 1, 1, 1>}]} {
    %c0 = arith.constant 0 : index
    %c0_0 = arith.constant 0 : index
    %c0_1 = arith.constant 0 : index
    %0 = vector.load %arg2[%c0, %c0_0, %c0_1] : memref<1x8x128xf32, #tpu.memory_space<vmem>>, vector<1x8x128xf32>
    %1 = vector.shape_cast %0 : vector<1x8x128xf32> to vector<8x128xf32>
    %2 = arith.truncf %1 : vector<8x128xf32> to vector<8x128xbf16>
    %3 = vector.shape_cast %2 : vector<8x128xbf16> to vector<1x8x128xbf16>
    %4 = vector.broadcast %3 : vector<1x8x128xbf16> to vector<2x8x128xbf16>
    %c0_2 = arith.constant 0 : index
    %c0_3 = arith.constant 0 : index
    %c0_4 = arith.constant 0 : index
    %5 = vector.load %arg4[%c0_2, %c0_3, %c0_4] : memref<2x128x64xbf16, #tpu.memory_space<vmem>>, vector<2x128x64xbf16>
    "tpu.trace_start"() <{level = 10 : i32, message = "nsh,nhd->nsd"}> : () -> ()
    %cst = arith.constant dense<0.000000e+00> : vector<2x8x64xf32>
    %6 = tpu.matmul %4, %5, %cst {dimension_numbers = #tpu.dot_dimension_numbers<[2], [1], [1], [2], [0, 0, 0, 1, 1, 2], [0], [0]>} : vector<2x8x128xbf16>, vector<2x128x64xbf16>, vector<2x8x64xf32> -> vector<2x8x64xf32>
    "tpu.trace_stop"() : () -> ()
    %c0_5 = arith.constant 0 : index
    %c0_6 = arith.constant 0 : index
    %c0_7 = arith.constant 0 : index
    %7 = vector.load %arg5[%c0_5, %c0_6, %c0_7] : memref<2x1x64xf32, #tpu.memory_space<vmem>>, vector<2x1x64xf32>
    %8 = vector.broadcast %7 : vector<2x1x64xf32> to vector<2x8x64xf32>
    %9 = arith.addf %6, %8 : vector<2x8x64xf32>
    %cst_8 = arith.constant 1.250000e-01 : f32
    %10 = vector.broadcast %cst_8 : f32 to vector<2x8x64xf32>
    %11 = arith.mulf %9, %10 : vector<2x8x64xf32>
    %12 = arith.truncf %11 : vector<2x8x64xf32> to vector<2x8x64xbf16>
    %c0_9 = arith.constant 0 : index
    %c0_10 = arith.constant 0 : index
    %c0_11 = arith.constant 0 : index
    %13 = vector.load %arg6[%c0_9, %c0_10, %c0_11] : memref<2x128x64xbf16, #tpu.memory_space<vmem>>, vector<2x128x64xbf16>
    "tpu.trace_start"() <{level = 10 : i32, message = "nsh,nhd->nsd"}> : () -> ()
    %cst_12 = arith.constant dense<0.000000e+00> : vector<2x8x64xf32>
    %14 = tpu.matmul %4, %13, %cst_12 {dimension_numbers = #tpu.dot_dimension_numbers<[2], [1], [1], [2], [0, 0, 0, 1, 1, 2], [0], [0]>} : vector<2x8x128xbf16>, vector<2x128x64xbf16>, vector<2x8x64xf32> -> vector<2x8x64xf32>
    "tpu.trace_stop"() : () -> ()
    %c0_13 = arith.constant 0 : index
    %c0_14 = arith.constant 0 : index
    %c0_15 = arith.constant 0 : index
    %15 = vector.load %arg7[%c0_13, %c0_14, %c0_15] : memref<2x1x64xf32, #tpu.memory_space<vmem>>, vector<2x1x64xf32>
    %16 = vector.broadcast %15 : vector<2x1x64xf32> to vector<2x8x64xf32>
    %17 = arith.addf %14, %16 : vector<2x8x64xf32>
    %18 = arith.truncf %17 : vector<2x8x64xf32> to vector<2x8x64xbf16>
    %c0_16 = arith.constant 0 : index
    %c0_17 = arith.constant 0 : index
    %c0_18 = arith.constant 0 : index
    %19 = vector.load %arg8[%c0_16, %c0_17, %c0_18] : memref<2x128x64xbf16, #tpu.memory_space<vmem>>, vector<2x128x64xbf16>
    "tpu.trace_start"() <{level = 10 : i32, message = "nsh,nhd->nsd"}> : () -> ()
    %cst_19 = arith.constant dense<0.000000e+00> : vector<2x8x64xf32>
    %20 = tpu.matmul %4, %19, %cst_19 {dimension_numbers = #tpu.dot_dimension_numbers<[2], [1], [1], [2], [0, 0, 0, 1, 1, 2], [0], [0]>} : vector<2x8x128xbf16>, vector<2x128x64xbf16>, vector<2x8x64xf32> -> vector<2x8x64xf32>
    "tpu.trace_stop"() : () -> ()
    %c0_20 = arith.constant 0 : index
    %c0_21 = arith.constant 0 : index
    %c0_22 = arith.constant 0 : index
    %21 = vector.load %arg9[%c0_20, %c0_21, %c0_22] : memref<2x1x64xf32, #tpu.memory_space<vmem>>, vector<2x1x64xf32>
    %22 = vector.broadcast %21 : vector<2x1x64xf32> to vector<2x8x64xf32>
    %23 = arith.addf %20, %22 : vector<2x8x64xf32>
    %24 = arith.truncf %23 : vector<2x8x64xf32> to vector<2x8x64xbf16>
    %25 = tpu.iota {dimensions = array<i32: 2>} : vector<1x1x8xi32>
    %26 = arith.index_cast %arg0 : i32 to index
    %27 = memref.load %arg1[%26] : memref<2xi32, #tpu.memory_space<smem>>
    %28 = vector.broadcast %27 : i32 to vector<1x1x8xi32>
    %29 = arith.cmpi slt, %25, %28 : vector<1x1x8xi32>
    %cst_23 = arith.constant 0.000000e+00 : f32
    %cst_24 = arith.constant -1.000000e+09 : f32
    %30 = vector.broadcast %cst_23 : f32 to vector<1x1x8xf32>
    %31 = vector.broadcast %cst_24 : f32 to vector<1x1x8xf32>
    %32 = arith.select %29, %30, %31 : vector<1x1x8xi1>, vector<1x1x8xf32>
    "tpu.trace_start"() <{level = 10 : i32, message = "nqd,nkd->nqk"}> : () -> ()
    %cst_25 = arith.constant dense<0.000000e+00> : vector<2x8x8xf32>
    %33 = tpu.matmul %12, %18, %cst_25 {dimension_numbers = #tpu.dot_dimension_numbers<[2], [2], [1], [1], [0, 0, 0, 1, 1, 1], [0], [0]>} : vector<2x8x64xbf16>, vector<2x8x64xbf16>, vector<2x8x8xf32> -> vector<2x8x8xf32>
    "tpu.trace_stop"() : () -> ()
    %34 = vector.broadcast %32 : vector<1x1x8xf32> to vector<2x8x8xf32>
    %35 = arith.addf %33, %34 : vector<2x8x8xf32>
    %cst_26 = arith.constant dense<0xFF800000> : vector<2x8xf32>
    %36 = vector.multi_reduction <maximumf>, %35, %cst_26 [2] : vector<2x8x8xf32> to vector<2x8xf32>
    %37 = vector.shape_cast %36 : vector<2x8xf32> to vector<2x8x1xf32>
    %38 = vector.broadcast %37 : vector<2x8x1xf32> to vector<2x8x8xf32>
    %39 = arith.subf %35, %38 : vector<2x8x8xf32>
    %40 = math.exp %39 : vector<2x8x8xf32>
    %cst_27 = arith.constant dense<0.000000e+00> : vector<2x8xf32>
    %41 = vector.multi_reduction <add>, %40, %cst_27 [2] : vector<2x8x8xf32> to vector<2x8xf32>
    %42 = vector.shape_cast %41 : vector<2x8xf32> to vector<2x8x1xf32>
    %43 = vector.broadcast %42 : vector<2x8x1xf32> to vector<2x8x8xf32>
    %44 = arith.divf %40, %43 : vector<2x8x8xf32>
    %45 = arith.truncf %44 : vector<2x8x8xf32> to vector<2x8x8xbf16>
    "tpu.trace_start"() <{level = 10 : i32, message = "nqk,nkd->nqd"}> : () -> ()
    %cst_28 = arith.constant dense<0.000000e+00> : vector<2x8x64xf32>
    %46 = tpu.matmul %45, %24, %cst_28 {dimension_numbers = #tpu.dot_dimension_numbers<[2], [1], [1], [2], [0, 0, 0, 1, 1, 2], [0], [0]>} : vector<2x8x8xbf16>, vector<2x8x64xbf16>, vector<2x8x64xf32> -> vector<2x8x64xf32>
    "tpu.trace_stop"() : () -> ()
    %47 = arith.truncf %46 : vector<2x8x64xf32> to vector<2x8x64xbf16>
    %c0_29 = arith.constant 0 : index
    %c0_30 = arith.constant 0 : index
    %c0_31 = arith.constant 0 : index
    %48 = vector.load %arg10[%c0_29, %c0_30, %c0_31] : memref<2x64x128xbf16, #tpu.memory_space<vmem>>, vector<2x64x128xbf16>
    "tpu.trace_start"() <{level = 10 : i32, message = "nqd,ndh->nqh"}> : () -> ()
    %cst_32 = arith.constant dense<0.000000e+00> : vector<2x8x128xf32>
    %49 = tpu.matmul %47, %48, %cst_32 {dimension_numbers = #tpu.dot_dimension_numbers<[2], [1], [1], [2], [0, 0, 0, 1, 1, 2], [0], [0]>} : vector<2x8x64xbf16>, vector<2x64x128xbf16>, vector<2x8x128xf32> -> vector<2x8x128xf32>
    "tpu.trace_stop"() : () -> ()
    %cst_33 = arith.constant dense<0.000000e+00> : vector<8x128xf32>
    %50 = vector.multi_reduction <add>, %49, %cst_33 [0] : vector<2x8x128xf32> to vector<8x128xf32>
    %c0_34 = arith.constant 0 : index
    %c0_35 = arith.constant 0 : index
    %51 = vector.load %arg11[%c0_34, %c0_35] : memref<1x128xf32, #tpu.memory_space<vmem>>, vector<1x128xf32>
    %52 = vector.broadcast %51 : vector<1x128xf32> to vector<8x128xf32>
    %53 = arith.addf %50, %52 : vector<8x128xf32>
    %54 = arith.addf %1, %53 : vector<8x128xf32>
    %cst_36 = arith.constant dense<0.000000e+00> : vector<8xf32>
    %55 = vector.multi_reduction <add>, %54, %cst_36 [1] : vector<8x128xf32> to vector<8xf32>
    %56 = vector.shape_cast %55 : vector<8xf32> to vector<8x1xf32>
    %cst_37 = arith.constant 1.280000e+02 : f32
    %57 = vector.broadcast %cst_37 : f32 to vector<8x1xf32>
    %58 = arith.divf %56, %57 : vector<8x1xf32>
    %59 = vector.broadcast %58 : vector<8x1xf32> to vector<8x128xf32>
    %60 = arith.subf %54, %59 : vector<8x128xf32>
    %61 = arith.mulf %60, %60 : vector<8x128xf32>
    %cst_38 = arith.constant dense<0.000000e+00> : vector<8xf32>
    %62 = vector.multi_reduction <add>, %61, %cst_38 [1] : vector<8x128xf32> to vector<8xf32>
    %63 = vector.shape_cast %62 : vector<8xf32> to vector<8x1xf32>
    %cst_39 = arith.constant 1.280000e+02 : f32
    %64 = vector.broadcast %cst_39 : f32 to vector<8x1xf32>
    %65 = arith.divf %63, %64 : vector<8x1xf32>
    %66 = vector.broadcast %58 : vector<8x1xf32> to vector<8x128xf32>
    %67 = arith.subf %54, %66 : vector<8x128xf32>
    %cst_40 = arith.constant 9.99999996E-13 : f32
    %68 = vector.broadcast %cst_40 : f32 to vector<8x1xf32>
    %69 = arith.addf %65, %68 : vector<8x1xf32>
    %70 = math.rsqrt %69 : vector<8x1xf32>
    %71 = vector.broadcast %70 : vector<8x1xf32> to vector<8x128xf32>
    %72 = arith.mulf %67, %71 : vector<8x128xf32>
    %c0_41 = arith.constant 0 : index
    %c0_42 = arith.constant 0 : index
    %73 = vector.load %arg12[%c0_41, %c0_42] : memref<1x128xf32, #tpu.memory_space<vmem>>, vector<1x128xf32>
    %74 = vector.broadcast %73 : vector<1x128xf32> to vector<8x128xf32>
    %75 = arith.mulf %72, %74 : vector<8x128xf32>
    %c0_43 = arith.constant 0 : index
    %c0_44 = arith.constant 0 : index
    %76 = vector.load %arg13[%c0_43, %c0_44] : memref<1x128xf32, #tpu.memory_space<vmem>>, vector<1x128xf32>
    %77 = vector.broadcast %76 : vector<1x128xf32> to vector<8x128xf32>
    %78 = arith.addf %75, %77 : vector<8x128xf32>
    %79 = arith.truncf %78 : vector<8x128xf32> to vector<8x128xbf16>
    %c0_45 = arith.constant 0 : index
    %c0_46 = arith.constant 0 : index
    %80 = vector.load %arg14[%c0_45, %c0_46] : memref<128x256xbf16, #tpu.memory_space<vmem>>, vector<128x256xbf16>
    %cst_47 = arith.constant dense<0.000000e+00> : vector<8x256xf32>
    %81 = tpu.matmul %79, %80, %cst_47 {dimension_numbers = #tpu.dot_dimension_numbers<[1], [0], [0], [1], [0, 0, 1, 1], [], []>} : vector<8x128xbf16>, vector<128x256xbf16>, vector<8x256xf32> -> vector<8x256xf32>
    %c0_48 = arith.constant 0 : index
    %c0_49 = arith.constant 0 : index
    %82 = vector.load %arg15[%c0_48, %c0_49] : memref<1x256xf32, #tpu.memory_space<vmem>>, vector<1x256xf32>
    %83 = vector.broadcast %82 : vector<1x256xf32> to vector<8x256xf32>
    %84 = arith.addf %81, %83 : vector<8x256xf32>
    %85 = arith.mulf %84, %84 : vector<8x256xf32>
    %86 = arith.mulf %84, %85 : vector<8x256xf32>
    %cst_50 = arith.constant 4.471500e-02 : f32
    %87 = vector.broadcast %cst_50 : f32 to vector<8x256xf32>
    %88 = arith.mulf %87, %86 : vector<8x256xf32>
    %89 = arith.addf %84, %88 : vector<8x256xf32>
    %cst_51 = arith.constant 0.797884583 : f32
    %90 = vector.broadcast %cst_51 : f32 to vector<8x256xf32>
    %91 = arith.mulf %90, %89 : vector<8x256xf32>
    %92 = math.tanh %91 : vector<8x256xf32>
    %cst_52 = arith.constant 1.000000e+00 : f32
    %93 = vector.broadcast %cst_52 : f32 to vector<8x256xf32>
    %94 = arith.addf %93, %92 : vector<8x256xf32>
    %cst_53 = arith.constant 5.000000e-01 : f32
    %95 = vector.broadcast %cst_53 : f32 to vector<8x256xf32>
    %96 = arith.mulf %95, %94 : vector<8x256xf32>
    %97 = arith.mulf %84, %96 : vector<8x256xf32>
    %98 = arith.truncf %97 : vector<8x256xf32> to vector<8x256xbf16>
    %c0_54 = arith.constant 0 : index
    %c0_55 = arith.constant 0 : index
    %99 = vector.load %arg16[%c0_54, %c0_55] : memref<256x128xbf16, #tpu.memory_space<vmem>>, vector<256x128xbf16>
    %cst_56 = arith.constant dense<0.000000e+00> : vector<8x128xf32>
    %100 = tpu.matmul %98, %99, %cst_56 {dimension_numbers = #tpu.dot_dimension_numbers<[1], [0], [0], [1], [0, 0, 1, 1], [], []>} : vector<8x256xbf16>, vector<256x128xbf16>, vector<8x128xf32> -> vector<8x128xf32>
    %c0_57 = arith.constant 0 : index
    %c0_58 = arith.constant 0 : index
    %101 = vector.load %arg17[%c0_57, %c0_58] : memref<1x128xf32, #tpu.memory_space<vmem>>, vector<1x128xf32>
    %102 = vector.broadcast %101 : vector<1x128xf32> to vector<8x128xf32>
    %103 = arith.addf %100, %102 : vector<8x128xf32>
    %104 = arith.addf %78, %103 : vector<8x128xf32>
    %cst_59 = arith.constant dense<0.000000e+00> : vector<8xf32>
    %105 = vector.multi_reduction <add>, %104, %cst_59 [1] : vector<8x128xf32> to vector<8xf32>
    %106 = vector.shape_cast %105 : vector<8xf32> to vector<8x1xf32>
    %cst_60 = arith.constant 1.280000e+02 : f32
    %107 = vector.broadcast %cst_60 : f32 to vector<8x1xf32>
    %108 = arith.divf %106, %107 : vector<8x1xf32>
    %109 = vector.broadcast %108 : vector<8x1xf32> to vector<8x128xf32>
    %110 = arith.subf %104, %109 : vector<8x128xf32>
    %111 = arith.mulf %110, %110 : vector<8x128xf32>
    %cst_61 = arith.constant dense<0.000000e+00> : vector<8xf32>
    %112 = vector.multi_reduction <add>, %111, %cst_61 [1] : vector<8x128xf32> to vector<8xf32>
    %113 = vector.shape_cast %112 : vector<8xf32> to vector<8x1xf32>
    %cst_62 = arith.constant 1.280000e+02 : f32
    %114 = vector.broadcast %cst_62 : f32 to vector<8x1xf32>
    %115 = arith.divf %113, %114 : vector<8x1xf32>
    %116 = vector.broadcast %108 : vector<8x1xf32> to vector<8x128xf32>
    %117 = arith.subf %104, %116 : vector<8x128xf32>
    %cst_63 = arith.constant 9.99999996E-13 : f32
    %118 = vector.broadcast %cst_63 : f32 to vector<8x1xf32>
    %119 = arith.addf %115, %118 : vector<8x1xf32>
    %120 = math.rsqrt %119 : vector<8x1xf32>
    %121 = vector.broadcast %120 : vector<8x1xf32> to vector<8x128xf32>
    %122 = arith.mulf %117, %121 : vector<8x128xf32>
    %c0_64 = arith.constant 0 : index
    %c0_65 = arith.constant 0 : index
    %123 = vector.load %arg18[%c0_64, %c0_65] : memref<1x128xf32, #tpu.memory_space<vmem>>, vector<1x128xf32>
    %124 = vector.broadcast %123 : vector<1x128xf32> to vector<8x128xf32>
    %125 = arith.mulf %122, %124 : vector<8x128xf32>
    %c0_66 = arith.constant 0 : index
    %c0_67 = arith.constant 0 : index
    %126 = vector.load %arg19[%c0_66, %c0_67] : memref<1x128xf32, #tpu.memory_space<vmem>>, vector<1x128xf32>
    %127 = vector.broadcast %126 : vector<1x128xf32> to vector<8x128xf32>
    %128 = arith.addf %125, %127 : vector<8x128xf32>
    %129 = arith.truncf %128 : vector<8x128xf32> to vector<8x128xbf16>
    %c0_68 = arith.constant 0 : index
    %c0_69 = arith.constant 0 : index
    %130 = vector.load %arg20[%c0_68, %c0_69] : memref<128x4xbf16, #tpu.memory_space<vmem>>, vector<128x4xbf16>
    %cst_70 = arith.constant dense<0.000000e+00> : vector<8x4xf32>
    %131 = tpu.matmul %129, %130, %cst_70 {dimension_numbers = #tpu.dot_dimension_numbers<[1], [0], [0], [1], [0, 0, 1, 1], [], []>} : vector<8x128xbf16>, vector<128x4xbf16>, vector<8x4xf32> -> vector<8x4xf32>
    %c0_71 = arith.constant 0 : index
    %c0_72 = arith.constant 0 : index
    %132 = vector.load %arg21[%c0_71, %c0_72] : memref<1x4xf32, #tpu.memory_space<vmem>>, vector<1x4xf32>
    %133 = vector.broadcast %132 : vector<1x4xf32> to vector<8x4xf32>
    %134 = arith.addf %131, %133 : vector<8x4xf32>
    %c0_73 = arith.constant 0 : index
    %c0_74 = arith.constant 0 : index
    %c0_75 = arith.constant 0 : index
    %135 = vector.load %arg22[%c0_73, %c0_74, %c0_75] : memref<1x8x4xf32, #tpu.memory_space<vmem>>, vector<1x8x4xf32>
    %136 = vector.shape_cast %135 : vector<1x8x4xf32> to vector<8x4xf32>
    %137 = vector.shape_cast %134 : vector<8x4xf32> to vector<1x8x4xf32>
    tpu.vector_store %arg22[%c0_73, %c0_74, %c0_75], %137 {strides = array<i32>} : memref<1x8x4xf32, #tpu.memory_space<vmem>>, vector<1x8x4xf32>,
    %c0_76 = arith.constant 0 : index
    %c0_77 = arith.constant 0 : index
    %c0_78 = arith.constant 0 : index
    %138 = vector.load %arg3[%c0_76, %c0_77, %c0_78] : memref<1x8x2xi32, #tpu.memory_space<vmem>>, vector<1x8x2xi32>
    %139 = vector.shape_cast %138 : vector<1x8x2xi32> to vector<8x2xi32>
    %140 = vector.extract_strided_slice %134 {offsets = [0, 0], sizes = [8, 2], strides = [1, 1]} : vector<8x4xf32> to vector<8x2xf32>
    %141 = vector.extract_strided_slice %139 {offsets = [0, 0], sizes = [8, 1], strides = [1, 1]} : vector<8x2xi32> to vector<8x1xi32>
    %cst_79 = arith.constant dense<0xFF800000> : vector<8xf32>
    %142 = vector.multi_reduction <maximumf>, %140, %cst_79 [1] : vector<8x2xf32> to vector<8xf32>
    %143 = vector.shape_cast %142 : vector<8xf32> to vector<8x1xf32>
    %144 = vector.broadcast %143 : vector<8x1xf32> to vector<8x2xf32>
    %145 = arith.subf %140, %144 : vector<8x2xf32>
    %146 = math.exp %145 : vector<8x2xf32>
    %cst_80 = arith.constant dense<0.000000e+00> : vector<8xf32>
    %147 = vector.multi_reduction <add>, %146, %cst_80 [1] : vector<8x2xf32> to vector<8xf32>
    %148 = vector.shape_cast %147 : vector<8xf32> to vector<8x1xf32>
    %149 = math.log %148 : vector<8x1xf32>
    %150 = arith.addf %143, %149 : vector<8x1xf32>
    %151 = tpu.iota {dimensions = array<i32: 1>} : vector<8x2xi32>
    %152 = vector.broadcast %141 : vector<8x1xi32> to vector<8x2xi32>
    %153 = arith.cmpi eq, %151, %152 : vector<8x2xi32>
    %154 = arith.extui %153 : vector<8x2xi1> to vector<8x2xi32>
    %155 = arith.sitofp %154 : vector<8x2xi32> to vector<8x2xf32>
    %156 = arith.mulf %140, %155 : vector<8x2xf32>
    %cst_81 = arith.constant dense<0.000000e+00> : vector<8xf32>
    %157 = vector.multi_reduction <add>, %156, %cst_81 [1] : vector<8x2xf32> to vector<8xf32>
    %158 = vector.shape_cast %157 : vector<8xf32> to vector<8x1xf32>
    %159 = arith.subf %150, %158 : vector<8x1xf32>
    %cst_82 = arith.constant dense<0.000000e+00> : vector<1xf32>
    %160 = vector.multi_reduction <add>, %159, %cst_82 [0] : vector<8x1xf32> to vector<1xf32>
    %161 = vector.shape_cast %160 : vector<1xf32> to vector<1x1xf32>
    %162 = vector.extract_strided_slice %134 {offsets = [0, 2], sizes = [8, 2], strides = [1, 1]} : vector<8x4xf32> to vector<8x2xf32>
    %163 = vector.extract_strided_slice %139 {offsets = [0, 1], sizes = [8, 1], strides = [1, 1]} : vector<8x2xi32> to vector<8x1xi32>
    %cst_83 = arith.constant dense<0xFF800000> : vector<8xf32>
    %164 = vector.multi_reduction <maximumf>, %162, %cst_83 [1] : vector<8x2xf32> to vector<8xf32>
    %165 = vector.shape_cast %164 : vector<8xf32> to vector<8x1xf32>
    %166 = vector.broadcast %165 : vector<8x1xf32> to vector<8x2xf32>
    %167 = arith.subf %162, %166 : vector<8x2xf32>
    %168 = math.exp %167 : vector<8x2xf32>
    %cst_84 = arith.constant dense<0.000000e+00> : vector<8xf32>
    %169 = vector.multi_reduction <add>, %168, %cst_84 [1] : vector<8x2xf32> to vector<8xf32>
    %170 = vector.shape_cast %169 : vector<8xf32> to vector<8x1xf32>
    %171 = math.log %170 : vector<8x1xf32>
    %172 = arith.addf %165, %171 : vector<8x1xf32>
    %173 = tpu.iota {dimensions = array<i32: 1>} : vector<8x2xi32>
    %174 = vector.broadcast %163 : vector<8x1xi32> to vector<8x2xi32>
    %175 = arith.cmpi eq, %173, %174 : vector<8x2xi32>
    %176 = arith.extui %175 : vector<8x2xi1> to vector<8x2xi32>
    %177 = arith.sitofp %176 : vector<8x2xi32> to vector<8x2xf32>
    %178 = arith.mulf %162, %177 : vector<8x2xf32>
    %cst_85 = arith.constant dense<0.000000e+00> : vector<8xf32>
    %179 = vector.multi_reduction <add>, %178, %cst_85 [1] : vector<8x2xf32> to vector<8xf32>
    %180 = vector.shape_cast %179 : vector<8xf32> to vector<8x1xf32>
    %181 = arith.subf %172, %180 : vector<8x1xf32>
    %cst_86 = arith.constant dense<0.000000e+00> : vector<1xf32>
    %182 = vector.multi_reduction <add>, %181, %cst_86 [0] : vector<8x1xf32> to vector<1xf32>
    %183 = vector.shape_cast %182 : vector<1xf32> to vector<1x1xf32>
    %184 = arith.addf %161, %183 : vector<1x1xf32>
    %c0_87 = arith.constant 0 : index
    %c0_88 = arith.constant 0 : index
    %c0_89 = arith.constant 0 : index
    %185 = vector.load %arg23[%c0_87, %c0_88, %c0_89] : memref<1x1x1xf32, #tpu.memory_space<vmem>>, vector<1x1x1xf32>
    %186 = vector.shape_cast %185 : vector<1x1x1xf32> to vector<1x1xf32>
    %187 = vector.shape_cast %184 : vector<1x1xf32> to vector<1x1x1xf32>
    tpu.vector_store %arg23[%c0_87, %c0_88, %c0_89], %187 {strides = array<i32>} : memref<1x1x1xf32, #tpu.memory_space<vmem>>, vector<1x1x1xf32>,
    return
  }
  func.func @transform_0(%arg0: i32, %arg1: memref<2xi32, #tpu.memory_space<smem>>) -> (i32, i32, i32) {
    %c0_i32 = arith.constant 0 : i32
    %c0_i32_0 = arith.constant 0 : i32
    %c0_i32_1 = arith.constant 0 : i32
    return %arg0, %c0_i32, %c0_i32_0 : i32, i32, i32
  }
  func.func @transform_1(%arg0: i32, %arg1: memref<2xi32, #tpu.memory_space<smem>>) -> (i32, i32, i32) {
    %c0_i32 = arith.constant 0 : i32
    %c0_i32_0 = arith.constant 0 : i32
    %c0_i32_1 = arith.constant 0 : i32
    return %arg0, %c0_i32, %c0_i32_0 : i32, i32, i32
  }
  func.func @transform_2(%arg0: i32, %arg1: memref<2xi32, #tpu.memory_space<smem>>) -> (i32, i32, i32) {
    %c0_i32 = arith.constant 0 : i32
    %c0_i32_0 = arith.constant 0 : i32
    %c0_i32_1 = arith.constant 0 : i32
    %c0_i32_2 = arith.constant 0 : i32
    return %c0_i32, %c0_i32_0, %c0_i32_1 : i32, i32, i32
  }
  func.func @transform_3(%arg0: i32, %arg1: memref<2xi32, #tpu.memory_space<smem>>) -> (i32, i32, i32) {
    %c0_i32 = arith.constant 0 : i32
    %c0_i32_0 = arith.constant 0 : i32
    %c0_i32_1 = arith.constant 0 : i32
    %c0_i32_2 = arith.constant 0 : i32
    return %c0_i32, %c0_i32_0, %c0_i32_1 : i32, i32, i32
  }
  func.func @transform_4(%arg0: i32, %arg1: memref<2xi32, #tpu.memory_space<smem>>) -> (i32, i32, i32) {
    %c0_i32 = arith.constant 0 : i32
    %c0_i32_0 = arith.constant 0 : i32
    %c0_i32_1 = arith.constant 0 : i32
    %c0_i32_2 = arith.constant 0 : i32
    return %c0_i32, %c0_i32_0, %c0_i32_1 : i32, i32, i32
  }
  func.func @transform_5(%arg0: i32, %arg1: memref<2xi32, #tpu.memory_space<smem>>) -> (i32, i32, i32) {
    %c0_i32 = arith.constant 0 : i32
    %c0_i32_0 = arith.constant 0 : i32
    %c0_i32_1 = arith.constant 0 : i32
    %c0_i32_2 = arith.constant 0 : i32
    return %c0_i32, %c0_i32_0, %c0_i32_1 : i32, i32, i32
  }
  func.func @transform_6(%arg0: i32, %arg1: memref<2xi32, #tpu.memory_space<smem>>) -> (i32, i32, i32) {
    %c0_i32 = arith.constant 0 : i32
    %c0_i32_0 = arith.constant 0 : i32
    %c0_i32_1 = arith.constant 0 : i32
    %c0_i32_2 = arith.constant 0 : i32
    return %c0_i32, %c0_i32_0, %c0_i32_1 : i32, i32, i32
  }
  func.func @transform_7(%arg0: i32, %arg1: memref<2xi32, #tpu.memory_space<smem>>) -> (i32, i32, i32) {
    %c0_i32 = arith.constant 0 : i32
    %c0_i32_0 = arith.constant 0 : i32
    %c0_i32_1 = arith.constant 0 : i32
    %c0_i32_2 = arith.constant 0 : i32
    return %c0_i32, %c0_i32_0, %c0_i32_1 : i32, i32, i32
  }
  func.func @transform_8(%arg0: i32, %arg1: memref<2xi32, #tpu.memory_space<smem>>) -> (i32, i32, i32) {
    %c0_i32 = arith.constant 0 : i32
    %c0_i32_0 = arith.constant 0 : i32
    %c0_i32_1 = arith.constant 0 : i32
    %c0_i32_2 = arith.constant 0 : i32
    return %c0_i32, %c0_i32_0, %c0_i32_1 : i32, i32, i32
  }
  func.func @transform_9(%arg0: i32, %arg1: memref<2xi32, #tpu.memory_space<smem>>) -> (i32, i32) {
    %c0_i32 = arith.constant 0 : i32
    %c0_i32_0 = arith.constant 0 : i32
    %c0_i32_1 = arith.constant 0 : i32
    return %c0_i32, %c0_i32_0 : i32, i32
  }
  func.func @transform_10(%arg0: i32, %arg1: memref<2xi32, #tpu.memory_space<smem>>) -> (i32, i32) {
    %c0_i32 = arith.constant 0 : i32
    %c0_i32_0 = arith.constant 0 : i32
    %c0_i32_1 = arith.constant 0 : i32
    return %c0_i32, %c0_i32_0 : i32, i32
  }
  func.func @transform_11(%arg0: i32, %arg1: memref<2xi32, #tpu.memory_space<smem>>) -> (i32, i32) {
    %c0_i32 = arith.constant 0 : i32
    %c0_i32_0 = arith.constant 0 : i32
    %c0_i32_1 = arith.constant 0 : i32
    return %c0_i32, %c0_i32_0 : i32, i32
  }
  func.func @transform_12(%arg0: i32, %arg1: memref<2xi32, #tpu.memory_space<smem>>) -> (i32, i32) {
    %c0_i32 = arith.constant 0 : i32
    %c0_i32_0 = arith.constant 0 : i32
    %c0_i32_1 = arith.constant 0 : i32
    return %c0_i32, %c0_i32_0 : i32, i32
  }
  func.func @transform_13(%arg0: i32, %arg1: memref<2xi32, #tpu.memory_space<smem>>) -> (i32, i32) {
    %c0_i32 = arith.constant 0 : i32
    %c0_i32_0 = arith.constant 0 : i32
    %c0_i32_1 = arith.constant 0 : i32
    return %c0_i32, %c0_i32_0 : i32, i32
  }
  func.func @transform_14(%arg0: i32, %arg1: memref<2xi32, #tpu.memory_space<smem>>) -> (i32, i32) {
    %c0_i32 = arith.constant 0 : i32
    %c0_i32_0 = arith.constant 0 : i32
    %c0_i32_1 = arith.constant 0 : i32
    return %c0_i32, %c0_i32_0 : i32, i32
  }
  func.func @transform_15(%arg0: i32, %arg1: memref<2xi32, #tpu.memory_space<smem>>) -> (i32, i32) {
    %c0_i32 = arith.constant 0 : i32
    %c0_i32_0 = arith.constant 0 : i32
    %c0_i32_1 = arith.constant 0 : i32
    return %c0_i32, %c0_i32_0 : i32, i32
  }
  func.func @transform_16(%arg0: i32, %arg1: memref<2xi32, #tpu.memory_space<smem>>) -> (i32, i32) {
    %c0_i32 = arith.constant 0 : i32
    %c0_i32_0 = arith.constant 0 : i32
    %c0_i32_1 = arith.constant 0 : i32
    return %c0_i32, %c0_i32_0 : i32, i32
  }
  func.func @transform_17(%arg0: i32, %arg1: memref<2xi32, #tpu.memory_space<smem>>) -> (i32, i32) {
    %c0_i32 = arith.constant 0 : i32
    %c0_i32_0 = arith.constant 0 : i32
    %c0_i32_1 = arith.constant 0 : i32
    return %c0_i32, %c0_i32_0 : i32, i32
  }
  func.func @transform_18(%arg0: i32, %arg1: memref<2xi32, #tpu.memory_space<smem>>) -> (i32, i32) {
    %c0_i32 = arith.constant 0 : i32
    %c0_i32_0 = arith.constant 0 : i32
    %c0_i32_1 = arith.constant 0 : i32
    return %c0_i32, %c0_i32_0 : i32, i32
  }
  func.func @transform_19(%arg0: i32, %arg1: memref<2xi32, #tpu.memory_space<smem>>) -> (i32, i32) {
    %c0_i32 = arith.constant 0 : i32
    %c0_i32_0 = arith.constant 0 : i32
    %c0_i32_1 = arith.constant 0 : i32
    return %c0_i32, %c0_i32_0 : i32, i32
  }
  func.func @transform_20(%arg0: i32, %arg1: memref<2xi32, #tpu.memory_space<smem>>) -> (i32, i32, i32) {
    %c0_i32 = arith.constant 0 : i32
    %c0_i32_0 = arith.constant 0 : i32
    %c0_i32_1 = arith.constant 0 : i32
    return %arg0, %c0_i32, %c0_i32_0 : i32, i32, i32
  }
  func.func @transform_21(%arg0: i32, %arg1: memref<2xi32, #tpu.memory_space<smem>>) -> (i32, i32, i32) {
    %c0_i32 = arith.constant 0 : i32
    %c0_i32_0 = arith.constant 0 : i32
    %c0_i32_1 = arith.constant 0 : i32
    return %arg0, %c0_i32, %c0_i32_0 : i32, i32, i32
  }
}

</mosaic_0001>

<bundles_post_ra>
// kernel: tpu_custom_call.1
= control target key start
LH: loop header
LB: loop body
LE: loop exit
PB: predicated region body
PF: predicated region fallthrough
CT: control target
= control target key end

     0   :  { %s3642_s0 = inlined_call_operand.vmem [shape: s32[2], index: 0, kind: input, shape index: {}]   ;;  %s3643_s1 = inlined_call_operand.vmem [shape: f32[2,8,128], index: 1, kind: input, shape index: {}]   ;;  %s3644_s2 = inlined_call_operand.vmem [shape: s32[2,8,2], index: 2, kind: input, shape index: {}]   ;;  %s3645_s3 = inlined_call_operand.vmem [shape: bf16[2,128,64], index: 3, kind: input, shape index: {}]   ;;  %s3646_s4 = inlined_call_operand.vmem [shape: f32[2,1,64], index: 4, kind: input, shape index: {}]   ;;  %s3647_s5 = inlined_call_operand.vmem [shape: bf16[2,128,64], index: 5, kind: input, shape index: {}]   ;;  %s3648_s6 = inlined_call_operand.vmem [shape: f32[2,1,64], index: 6, kind: input, shape index: {}]   ;;  %s3649_s7 = inlined_call_operand.vmem [shape: bf16[2,128,64], index: 7, kind: input, shape index: {}]   ;;  %s3650_s8 = inlined_call_operand.vmem [shape: f32[2,1,64], index: 8, kind: input, shape index: {}]   ;;  %s3651_s9 = inlined_call_operand.vmem [shape: bf16[2,64,128], index: 9, kind: input, shape index: {}]   ;;  %s3652_s10 = inlined_call_operand.vmem [shape: f32[1,128], index: 10, kind: input, shape index: {}]   ;;  %s3653_s11 = inlined_call_operand.vmem [shape: f32[1,128], index: 11, kind: input, shape index: {}]   ;;  %s3654_s12 = inlined_call_operand.vmem [shape: f32[1,128], index: 12, kind: input, shape index: {}]   ;;  %s3655_s13 = inlined_call_operand.vmem [shape: bf16[128,256], index: 13, kind: input, shape index: {}]   ;;  %s3656_s14 = inlined_call_operand.vmem [shape: f32[1,256], index: 14, kind: input, shape index: {}]   ;;  %s3657_s15 = inlined_call_operand.vmem [shape: bf16[256,128], index: 15, kind: input, shape index: {}]   ;;  %s3658_s16 = inlined_call_operand.vmem [shape: f32[1,128], index: 16, kind: input, shape index: {}]   ;;  %s3659_s17 = inlined_call_operand.vmem [shape: f32[1,128], index: 17, kind: input, shape index: {}]   ;;  %s3660_s18 = inlined_call_operand.vmem [shape: f32[1,128], index: 18, kind: input, shape index: {}]   ;;  %s3661_s19 = inlined_call_operand.vmem [shape: bf16[128,4], index: 19, kind: input, shape index: {}]   ;;  %s3662_s20 = inlined_call_operand.vmem [shape: f32[1,4], index: 20, kind: input, shape index: {}]   ;;  %s3663_s21 = inlined_call_operand.vmem [shape: f32[2,8,4], index: 21, kind: output, shape index: {0}]   ;;  %s3664_s22 = inlined_call_operand.vmem [shape: f32[2,1,1], index: 22, kind: output, shape index: {1}]  }
   0x1   :  { %3670 = sst [smem:[#allocation5_spill]] %s3642_s0 }
   0x2   :  { %3671 = sst [smem:[#allocation6_spill]] %s3643_s1  ;;  %s3678_s29 = sld [smem:[#allocation5_spill]] }
   0x3   :  { %3672 = sst [smem:[#allocation7_spill]] %s3644_s2 }
   0x4   :  { %3673 = sst [smem:[#allocation8_spill]] %s3645_s3 }
   0x5   :  { %3674 = sst [smem:[#allocation9_spill]] %s3646_s4 }
   0x6   :  { %3675 = sst [smem:[#allocation10_spill]] %s3647_s5 }
   0x7   :  { %3676 = sst [smem:[#allocation11_spill]] %s3648_s6 }
   0x8   :  { %3677 = sst [smem:[#allocation12_spill]] %s3658_s16  ;;  %s28_s16 = sshll.u32 %s3678_s29, 4  ;;  %s29_s16 = int_to_ptr.vmem [resolvable:$true] %s28_s16 }
   0x9   :  { %s2987_s30 = scalar_lea.vmem %s29_s16, 16  ;;  %p2992_p1 = scmp.lt.s32.totalorder %s29_s16, %s29_s16 }
   0xa   :  { %p2988_p0 = scmp.ne.s32.totalorder %s29_s16, %s2987_s30  ;;  %p2993_p2 = scmp.lt.s32.totalorder %s2987_s30, %s2987_s30 }
   0xc   :  { %p2994_p3 = por %p2993_p2, %p2992_p1 }
   0xe   :  { %p2995_p4 = pnand %p2994_p3, %p2988_p0 }
  0x10   :  { %2998 = shalt.err (!%p2995_p4)  }
  0x11   :  { %s3009_s4 = smov [#allocation3]  }
  0x12   :  { %31 = dma.vmem_to_smem %s29_s16, 16, %s3009_s4, [#allocation2] }
  0x13   :  { %3003 = dma.done.wait [#allocation2], 16 }
  0x14   :  { %3004 = vsyncadd [#allocation2], 4294967280 }
  0x15   :  { %33 = sfence }
  0x16   :  { %s3135_s0 = smov 0  }
  0x17 LB: > { %s3141_s23 = sadd.s32 4294967295, %s3007_s0   ;;  %p2426_p5 = scmp.ge.s32.totalorder %s3007_s0, 1  ;;  %s3007_s0 = sphi %s3135_s0, %s39_s0  }
  0x18   : > { %p605_p6 = scmp.lt.s32.totalorder %s3007_s0, 3 }
  0x1a   : > { %p606_p7 = pnand %p2426_p5, %p605_p6 }
  0x1b   : > { %s3679_s5 = sld [smem:[#allocation8_spill]] (!%p606_p7)  ;;  %v3010_v1 = vmov (!%p606_p7), 0.0   ;;  %vm3011_vm0 = vmmov (!%p606_p7), 0   ;;  %p670_p8 = scmp.lt.s32.totalorder (!%p606_p7), %s3141_s23, 1  ;;  %v2891_v35 = vld [vmem:[%s3649_s7] sm:$0xff] (!%p606_p7)   ;;  %v2893_v37 = vld [vmem:[%s3649_s7 + $0x8] sm:$0xff] (!%p606_p7)  }
  0x1c   : > { %609 = sbr.rel (%p606_p7) target bundleno = 3061 (0xbf5), region = 100  ;;  %2652 = vmatprep.subr.bf16.mxu0 (!%p606_p7), %v3010_v1  ;;  %2672 = vmatprep.subr.bf16.mxu1 (!%p606_p7), %v3010_v1  ;;  %s3680_s2 = sld [smem:[#allocation6_spill]] (!%p606_p7)  ;;  %v2892_v36 = vld [vmem:[%s3649_s7 + $0x40] sm:$0xff] (!%p606_p7)   ;;  %v2894_v38 = vld [vmem:[%s3649_s7 + $0x48] sm:$0xff] (!%p606_p7)   ;;  %v2895_v39 = vld [vmem:[%s3649_s7 + $0x10] sm:$0xff] (!%p606_p7)   ;;  %vm1368_vm1 = vcmask (!%p606_p7), 523264  }
  0x1d   : > { %2668 = vmatprep.mubr.msk.bf16.mxu0 (!%p606_p7), %vm3011_vm0, %v3010_v1  ;;  %2688 = vmatprep.mubr.msk.bf16.mxu1 (!%p606_p7), %vm3011_vm0, %v3010_v1  ;;  %s3681_s6 = sld [smem:[#allocation10_spill]] (!%p606_p7)  ;;  %v2896_v40 = vld [vmem:[%s3649_s7 + $0x50] sm:$0xff] (!%p606_p7)   ;;  %v2897_v41 = vld [vmem:[%s3649_s7 + $0x18] sm:$0xff] (!%p606_p7)   ;;  %v2899_v43 = vld [vmem:[%s3649_s7 + $0x20] sm:$0xff] (!%p606_p7)   ;;  %s3682_s28 = sld [smem:[#allocation11_spill]] (!%p606_p7)  ;;  %vm1489_vm2 = vcmask (!%p606_p7), 1043456  }
  0x1e   : > { %v2898_v42 = vld [vmem:[%s3649_s7 + $0x58] sm:$0xff] (!%p606_p7)   ;;  %v2900_v44 = vld [vmem:[%s3649_s7 + $0x60] sm:$0xff] (!%p606_p7)   ;;  %v2901_v45 = vld [vmem:[%s3649_s7 + $0x28] sm:$0xff] (!%p606_p7)   ;;  %s3683_s24 = sld [smem:[#allocation9_spill]] (!%p606_p7)  ;;  %vm1461_vm4 = vcmask (!%p606_p7), 64512   ;;  %s3684_s25 = sld [smem:[#allocation12_spill]] (!%p606_p7) }
  0x1f   : > { %v2902_v46 = vld [vmem:[%s3649_s7 + $0x68] sm:$0xff] (!%p606_p7)   ;;  %v2903_v47 = vld [vmem:[%s3649_s7 + $0x30] sm:$0xff] (!%p606_p7)   ;;  %v2905_v49 = vld [vmem:[%s3649_s7 + $0x38] sm:$0xff] (!%p606_p7)   ;;  %s1364_s16 = sld [smem:[#allocation3 + %s3141_s23]] (!%p606_p7)  ;;  %vm2254_vm5 = vcmask (!%p606_p7), 31744   ;;  %vm2287_vm6 = vcmask (!%p606_p7), 31760  }
  0x20   : > { %v2904_v48 = vld [vmem:[%s3649_s7 + $0x70] sm:$0xff] (!%p606_p7)   ;;  %v2906_v50 = vld [vmem:[%s3649_s7 + $0x78] sm:$0xff] (!%p606_p7)   ;;  %s3685_s1 = sld [smem:[#allocation7_spill]] (!%p606_p7)  ;;  %vm2257_vm8 = vcmask (!%p606_p7), 15360   ;;  %vm2330_vm10 = vcmask (!%p606_p7), 0  }
  0x21   : > { %v2859_v0 = vld [vmem:[%s3679_s5] sm:$0xff] (!%p606_p7)   ;;  %v2861_v3 = vld [vmem:[%s3679_s5 + $0x8] sm:$0xff] (!%p606_p7)   ;;  %v2863_v5 = vld [vmem:[%s3679_s5 + $0x10] sm:$0xff] (!%p606_p7)  }
  0x22   : > { %v2860_v2 = vld [vmem:[%s3679_s5 + $0x40] sm:$0xff] (!%p606_p7)   ;;  %2653 = vmatpush3.bf16.msra.mxu0 (!%p606_p7), %v2859_v0  ;;  %v2862_v4 = vld [vmem:[%s3679_s5 + $0x48] sm:$0xff] (!%p606_p7)   ;;  %v2864_v6 = vld [vmem:[%s3679_s5 + $0x50] sm:$0xff] (!%p606_p7)  }
  0x23   : > { %2673 = vmatpush3.bf16.msra.mxu1 %v2860_v2  ;;  %2654 = vmatprep.subr.bf16.mxu0 %v3010_v1  ;;  %v2865_v7 = vld [vmem:[%s3679_s5 + $0x18] sm:$0xff]   ;;  %v2867_v9 = vld [vmem:[%s3679_s5 + $0x20] sm:$0xff]   ;;  %s3191_s27 = scalar_select %p670_p8, %s3141_s23, 1  ;;  %v2869_v11 = vld [vmem:[%s3679_s5 + $0x28] sm:$0xff]  }
  0x24   : > { %2674 = vmatprep.subr.bf16.mxu1 %v3010_v1  ;;  %v2866_v8 = vld [vmem:[%s3679_s5 + $0x58] sm:$0xff]   ;;  %v2868_v10 = vld [vmem:[%s3679_s5 + $0x60] sm:$0xff]   ;;  %v2870_v12 = vld [vmem:[%s3679_s5 + $0x68] sm:$0xff]  }
  0x25   : > { %s3202_s4 = sshll.u32 %s3191_s27, 3  ;;  %v2871_v13 = vld [vmem:[%s3679_s5 + $0x30] sm:$0xff]   ;;  %v2873_v15 = vld [vmem:[%s3679_s5 + $0x38] sm:$0xff]   ;;  %v2875_v19 = vld [vmem:[%s3681_s6] sm:$0xff]  }
  0x26   : > { %2655 = vmatpush3.bf16.msra.mxu0 %v2861_v3  ;;  %v2872_v14 = vld [vmem:[%s3679_s5 + $0x70] sm:$0xff]   ;;  %s673_s3 = scalar_lea.vmem %s3680_s2, %s3202_s4  ;;  %v2874_v17 = vld [vmem:[%s3679_s5 + $0x78] sm:$0xff]   ;;  %v2876_v20 = vld [vmem:[%s3681_s6 + $0x40] sm:$0xff]  }
  0x27   : > { %2675 = vmatpush3.bf16.msra.mxu1 %v2862_v4  ;;  %2656 = vmatprep.subr.bf16.mxu0 %v3010_v1  ;;  %v3219_v16 = vld [vmem:[%s673_s3] sm:$0xff]  ;;  %v2877_v21 = vld [vmem:[%s3681_s6 + $0x8] sm:$0xff]   ;;  %v2879_v23 = vld [vmem:[%s3681_s6 + $0x10] sm:$0xff]   ;;  %s684_s3 = scalar_lea.vmem %s3664_s22, %s3191_s27 }
  0x28   : > { %2676 = vmatprep.subr.bf16.mxu1 %v3010_v1  ;;  %v3228_v18 = vpack.c.bf16 %v3219_v16, %v3219_v16  ;;  %v2878_v22 = vld [vmem:[%s3681_s6 + $0x48] sm:$0xff]   ;;  %v2880_v24 = vld [vmem:[%s3681_s6 + $0x50] sm:$0xff]   ;;  %v2881_v25 = vld [vmem:[%s3681_s6 + $0x18] sm:$0xff]  }
  0x29   : > { %v2882_v26 = vld [vmem:[%s3681_s6 + $0x58] sm:$0xff]   ;;  %v2883_v27 = vld [vmem:[%s3681_s6 + $0x20] sm:$0xff]   ;;  %v2885_v29 = vld [vmem:[%s3681_s6 + $0x28] sm:$0xff]  }
  0x2a   : > { %2657 = vmatpush3.bf16.msra.mxu0 %v2863_v5  ;;  %v2884_v28 = vld [vmem:[%s3681_s6 + $0x60] sm:$0xff]   ;;  %v2886_v30 = vld [vmem:[%s3681_s6 + $0x68] sm:$0xff]   ;;  %v2887_v31 = vld [vmem:[%s3681_s6 + $0x30] sm:$0xff]  }
  0x2b   : > { %2677 = vmatpush3.bf16.msra.mxu1 %v2864_v6  ;;  %2658 = vmatprep.subr.bf16.mxu0 %v3010_v1  ;;  %v2888_v32 = vld [vmem:[%s3681_s6 + $0x70] sm:$0xff]   ;;  %v2889_v33 = vld [vmem:[%s3681_s6 + $0x38] sm:$0xff]   ;;  %v2448_v59 = vld [vmem:[%s3682_s28] ss:$0 sm:$0xff] }
  0x2c   : > { %2678 = vmatprep.subr.bf16.mxu1 %v3010_v1  ;;  %v2890_v34 = vld [vmem:[%s3681_s6 + $0x78] sm:$0xff]   ;;  %v2449_v60 = vld [vmem:[%s3682_s28 + $0x1] ss:$0 sm:$0xff]  ;;  %v2430_v61 = vld [vmem:[%s3683_s24] ss:$0 sm:$0xff] }
  0x2d   : > { %v2431_v63 = vld [vmem:[%s3683_s24 + $0x1] ss:$0 sm:$0xff] }
  0x2e   : > { %2659 = vmatpush3.bf16.msra.mxu0 %v2865_v7 }
  0x2f   : > { %2679 = vmatpush3.bf16.msra.mxu1 %v2866_v8  ;;  %2660 = vmatprep.subr.bf16.mxu0 %v3010_v1 }
  0x30   : > { %2680 = vmatprep.subr.bf16.mxu1 %v3010_v1 }
  0x32   : > { %2661 = vmatpush3.bf16.msra.mxu0 %v2867_v9 }
  0x33   : > { %2681 = vmatpush3.bf16.msra.mxu1 %v2868_v10  ;;  %2662 = vmatprep.subr.bf16.mxu0 %v3010_v1 }
  0x34   : > { %2682 = vmatprep.subr.bf16.mxu1 %v3010_v1 }
  0x36   : > { %2663 = vmatpush3.bf16.msra.mxu0 %v2869_v11 }
  0x37   : > { %2683 = vmatpush3.bf16.msra.mxu1 %v2870_v12  ;;  %2664 = vmatprep.subr.bf16.mxu0 %v3010_v1 }
  0x38   : > { %2684 = vmatprep.subr.bf16.mxu1 %v3010_v1 }
  0x3a   : > { %2665 = vmatpush3.bf16.msra.mxu0 %v2871_v13 }
  0x3b   : > { %2685 = vmatpush3.bf16.msra.mxu1 %v2872_v14  ;;  %2666 = vmatprep.subr.bf16.mxu0 %v3010_v1 }
  0x3c   : > { %2686 = vmatprep.subr.bf16.mxu1 %v3010_v1 }
  0x3e   : > { %2667 = vmatpush3.bf16.msra.mxu0 %v2873_v15 }
  0x3f   : > { %2687 = vmatpush3.bf16.msra.mxu1 %v2874_v17  ;;  %2692 = vmatprep.subr.bf16.mxu0 %v3010_v1 }
  0x40   : > { %2712 = vmatprep.subr.bf16.mxu1 %v3010_v1 }
  0x41   : > { %2669 = vmatmul.mubr.bf16.vlgmr.msra.gmra.mrb[0].mxu0 %v3228_v18 }
  0x42   : > { %2689 = vmatmul.mubr.bf16.vlgmr.msra.gmra.mrb[0].mxu1 %v3228_v18  ;;  %2693 = vmatpush3.bf16.msra.mxu0 %v2875_v19 }
  0x43   : > { %2713 = vmatpush3.bf16.msra.mxu1 %v2876_v20  ;;  %2694 = vmatprep.subr.bf16.mxu0 %v3010_v1 }
  0x44   : > { %2714 = vmatprep.subr.bf16.mxu1 %v3010_v1  ;;  %2708 = vmatprep.mubr.msk.bf16.mxu0 %vm3011_vm0, %v3010_v1 }
  0x45   : > { %2728 = vmatprep.mubr.msk.bf16.mxu1 %vm3011_vm0, %v3010_v1 }
  0x46   : > { %2695 = vmatpush3.bf16.msra.mxu0 %v2877_v21  ;;  %v2466_v21 = vld [vmem:[%s3650_s8] ss:$0 sm:$0xff] }
  0x47   : > { %2715 = vmatpush3.bf16.msra.mxu1 %v2878_v22  ;;  %2696 = vmatprep.subr.bf16.mxu0 %v3010_v1  ;;  %v2467_v22 = vld [vmem:[%s3650_s8 + $0x1] ss:$0 sm:$0xff] }
  0x48   : > { %2716 = vmatprep.subr.bf16.mxu1 %v3010_v1 }
  0x4a   : > { %2697 = vmatpush3.bf16.msra.mxu0 %v2879_v23 }
  0x4b   : > { %2717 = vmatpush3.bf16.msra.mxu1 %v2880_v24  ;;  %2698 = vmatprep.subr.bf16.mxu0 %v3010_v1 }
  0x4c   : > { %2718 = vmatprep.subr.bf16.mxu1 %v3010_v1 }
  0x4e   : > { %2699 = vmatpush3.bf16.msra.mxu0 %v2881_v25 }
  0x4f   : > { %2719 = vmatpush3.bf16.msra.mxu1 %v2882_v26  ;;  %2700 = vmatprep.subr.bf16.mxu0 %v3010_v1 }
  0x50   : > { %2720 = vmatprep.subr.bf16.mxu1 %v3010_v1 }
  0x52   : > { %2701 = vmatpush3.bf16.msra.mxu0 %v2883_v27 }
  0x53   : > { %2721 = vmatpush3.bf16.msra.mxu1 %v2884_v28  ;;  %2702 = vmatprep.subr.bf16.mxu0 %v3010_v1 }
  0x54   : > { %2722 = vmatprep.subr.bf16.mxu1 %v3010_v1 }
  0x56   : > { %2703 = vmatpush3.bf16.msra.mxu0 %v2885_v29 }
  0x57   : > { %2723 = vmatpush3.bf16.msra.mxu1 %v2886_v30  ;;  %2704 = vmatprep.subr.bf16.mxu0 %v3010_v1 }
  0x58   : > { %2724 = vmatprep.subr.bf16.mxu1 %v3010_v1 }
  0x5a   : > { %2705 = vmatpush3.bf16.msra.mxu0 %v2887_v31 }
  0x5b   : > { %2725 = vmatpush3.bf16.msra.mxu1 %v2888_v32  ;;  %2706 = vmatprep.subr.bf16.mxu0 %v3010_v1 }
  0x5c   : > { %2726 = vmatprep.subr.bf16.mxu1 %v3010_v1 }
  0x5e   : > { %2707 = vmatpush3.bf16.msra.mxu0 %v2889_v33 }
  0x5f   : > { %2727 = vmatpush3.bf16.msra.mxu1 %v2890_v34  ;;  %2732 = vmatprep.subr.bf16.mxu0 %v3010_v1 }
  0x60   : > { %2752 = vmatprep.subr.bf16.mxu1 %v3010_v1 }
  0x61   : > { %2709 = vmatmul.mubr.bf16.vlgmr.msra.gmra.mrb[4].mxu0 %v3228_v18 }
  0x62   : > { %2729 = vmatmul.mubr.bf16.vlgmr.msra.gmra.mrb[4].mxu1 %v3228_v18  ;;  %2748 = vmatprep.mubr.msk.bf16.mxu0 %vm3011_vm0, %v3010_v1 }
  0x63   : > { %2768 = vmatprep.mubr.msk.bf16.mxu1 %vm3011_vm0, %v3010_v1  ;;  %2733 = vmatpush3.bf16.msra.mxu0 %v2891_v35 }
  0x64   : > { %2753 = vmatpush3.bf16.msra.mxu1 %v2892_v36  ;;  %2734 = vmatprep.subr.bf16.mxu0 %v3010_v1 }
  0x65   : > { %2754 = vmatprep.subr.bf16.mxu1 %v3010_v1 }
  0x67   : > { %2735 = vmatpush3.bf16.msra.mxu0 %v2893_v37  ;;  %v1362_v37 = vlaneseq }
  0x68   : > { %2755 = vmatpush3.bf16.msra.mxu1 %v2894_v38  ;;  %2736 = vmatprep.subr.bf16.mxu0 %v3010_v1 }
  0x69   : > { %2756 = vmatprep.subr.bf16.mxu1 %v3010_v1  ;;  %v3409_v38 = vand.u32 127, %v1362_v37 }
  0x6b   : > { %2737 = vmatpush3.bf16.msra.mxu0 %v2895_v39  ;;  %v1365_v39 = vstv %s1364_s16 }
  0x6c   : > { %2757 = vmatpush3.bf16.msra.mxu1 %v2896_v40  ;;  %2738 = vmatprep.subr.bf16.mxu0 %v3010_v1  ;;  %vm1366_vm3 = vcmp.lt.s32.totalorder %v3409_v38, %v1365_v39  ;;  %v3012_v40 = vmov -1e+09  }
  0x6d   : > { %2758 = vmatprep.subr.bf16.mxu1 %v3010_v1 }
  0x6f   : > { %2739 = vmatpush3.bf16.msra.mxu0 %v2897_v41  ;;  %v1367_v41 = vsel %vm1366_vm3, 0.0, %v3012_v40 }
  0x70   : > { %2759 = vmatpush3.bf16.msra.mxu1 %v2898_v42  ;;  %2740 = vmatprep.subr.bf16.mxu0 %v3010_v1 }
  0x71   : > { %2760 = vmatprep.subr.bf16.mxu1 %v3010_v1 }
  0x73   : > { %2741 = vmatpush3.bf16.msra.mxu0 %v2899_v43 }
  0x74   : > { %2761 = vmatpush3.bf16.msra.mxu1 %v2900_v44  ;;  %2742 = vmatprep.subr.bf16.mxu0 %v3010_v1 }
  0x75   : > { %2762 = vmatprep.subr.bf16.mxu1 %v3010_v1 }
  0x77   : > { %2743 = vmatpush3.bf16.msra.mxu0 %v2901_v45 }
  0x78   : > { %2763 = vmatpush3.bf16.msra.mxu1 %v2902_v46  ;;  %2744 = vmatprep.subr.bf16.mxu0 %v3010_v1 }
  0x79   : > { %2764 = vmatprep.subr.bf16.mxu1 %v3010_v1 }
  0x7b   : > { %2745 = vmatpush3.bf16.msra.mxu0 %v2903_v47 }
  0x7c   : > { %2765 = vmatpush3.bf16.msra.mxu1 %v2904_v48  ;;  %2746 = vmatprep.subr.bf16.mxu0 %v3010_v1 }
  0x7d   : > { %2766 = vmatprep.subr.bf16.mxu1 %v3010_v1 }
  0x7f   : > { %2747 = vmatpush3.bf16.msra.mxu0 %v2905_v49 }
  0x80   : > { %2767 = vmatpush3.bf16.msra.mxu1 %v2906_v50  ;;  %2772 = vmatprep.subr.bf16.mxu0 %v3010_v1 }
  0x81   : > { %2778 = vmatprep.subr.bf16.mxu1 %v3010_v1 }
  0x82   : > { %2749 = vmatmul.mubr.bf16.vlgmr.msra.gmra.mrb[8].mxu0 %v3228_v18 }
  0x83   : > { %2769 = vmatmul.mubr.bf16.vlgmr.msra.gmra.mrb[8].mxu1 %v3228_v18  ;;  %2774 = vmatprep.mubr.msk.bf16.mxu0 %vm3011_vm0, %v3010_v1 }
  0x84   : > { %2780 = vmatprep.mubr.msk.bf16.mxu1 %vm3011_vm0, %v3010_v1 }
 0x114   : > { %v816_v51 = vpop.f32.mrb[0].mxu0 }
 0x115   : > { %v2670_v52 = vpop.f32.mrb[1].mxu0  ;;  %v904_v53 = vpop.f32.mrb[0].mxu1  ;;  %v817_v7 = vadd.f32 %v2430_v61, %v816_v51 }
 0x116   : > { %v819_v54 = vpop.f32.mrb[2].mxu0  ;;  %v2690_v55 = vpop.f32.mrb[1].mxu1  ;;  %v905_v11 = vadd.f32 %v2431_v63, %v904_v53 }
 0x117   : > { %v2671_v56 = vpop.f32.mrb[3].mxu0  ;;  %v907_v57 = vpop.f32.mrb[2].mxu1  ;;  %v910_v17 = vmul.f32 0.125, %v817_v7 }
 0x118   : > { %v2691_v58 = vpop.f32.mrb[3].mxu1  ;;  %v911_v18 = vmul.f32 0.125, %v905_v11  ;;  %v2909_v11 = vld [vmem:[%s3651_s9 + $0x10] sm:$0xff]  }
 0x119   : > { %v912_v19 = vpack.c.bf16 %v910_v17, %v910_v17 }
 0x11a   : > { %v913_v20 = vpack.c.bf16 %v911_v18, %v911_v18 }
 0x134   : > { %v1042_v62 = vpop.f32.mrb[4].mxu0 }
 0x135   : > { %v1043_v0 = vadd.f32 %v2448_v59, %v1042_v62  ;;  %v1130_v2 = vpop.f32.mrb[4].mxu1  ;;  %v2710_v3 = vpop.f32.mrb[5].mxu0 }
 0x136   : > { %v1131_v4 = vadd.f32 %v2449_v60, %v1130_v2  ;;  %v1045_v5 = vpop.f32.mrb[6].mxu0  ;;  %v2730_v6 = vpop.f32.mrb[5].mxu1 }
 0x137   : > { %v1136_v8 = vpack.c.bf16 %v1043_v0, %v1043_v0  ;;  %v2711_v9 = vpop.f32.mrb[7].mxu0  ;;  %v1133_v10 = vpop.f32.mrb[6].mxu1 }
 0x138   : > { %v1137_v12 = vpack.c.bf16 %v1131_v4, %v1131_v4  ;;  %v2731_v13 = vpop.f32.mrb[7].mxu1  ;;  %v2908_v10 = vld [vmem:[%s3651_s9 + $0x8] sm:$0xff]  }
 0x139   : > { %v1373_v14 = vsel %vm1368_vm1, %v1136_v8, 0  ;;  %v2907_v8 = vld [vmem:[%s3651_s9] sm:$0xff]  }
 0x13a   : > { %v1419_v15 = vsel %vm1368_vm1, %v1137_v12, 0  ;;  %2773 = vmatpush3.bf16.xpose.msra.mxu0 %v1373_v14  ;;  %v2910_v12 = vld [vmem:[%s3651_s9 + $0x18] sm:$0xff]   ;;  %v2911_v14 = vld [vmem:[%s3651_s9 + $0x20] sm:$0xff]  }
 0x13b   : > { %2779 = vmatpush3.bf16.xpose.msra.mxu1 %v1419_v15  ;;  %2784 = vmatprep.subr.bf16.mxu0 %v3010_v1 }
 0x13c   : > { %2790 = vmatprep.subr.bf16.mxu1 %v3010_v1 }
 0x141   : > { %2775 = vmatmul.mubr.msk.bf16.vlgmr.msra.gmra.mrb[12].mxu0 %vm1368_vm1, %v912_v19 }
 0x142   : > { %2781 = vmatmul.mubr.msk.bf16.vlgmr.msra.gmra.mrb[12].mxu1 %vm1368_vm1, %v913_v20  ;;  %2786 = vmatprep.mubr.msk.bf16.mxu0 %vm3011_vm0, %v3010_v1 }
 0x143   : > { %2792 = vmatprep.mubr.msk.bf16.mxu1 %vm3011_vm0, %v3010_v1 }
 0x155   : > { %v1266_v23 = vpop.f32.mrb[8].mxu0 }
 0x156   : > { %v1354_v24 = vpop.f32.mrb[8].mxu1  ;;  %v1267_v25 = vadd.f32 %v2466_v21, %v1266_v23  ;;  %v2750_v26 = vpop.f32.mrb[9].mxu0  ;;  %v2912_v21 = vld [vmem:[%s3651_s9 + $0x28] sm:$0xff]  }
 0x157   : > { %v1355_v27 = vadd.f32 %v2467_v22, %v1354_v24  ;;  %v2770_v28 = vpop.f32.mrb[9].mxu1  ;;  %v1269_v29 = vpop.f32.mrb[10].mxu0  ;;  %v2914_v26 = vld [vmem:[%s3651_s9 + $0x38] sm:$0xff]  }
 0x158   : > { %v1357_v30 = vpop.f32.mrb[10].mxu1  ;;  %v1360_v31 = vpack.c.bf16 %v1267_v25, %v1267_v25  ;;  %v2751_v32 = vpop.f32.mrb[11].mxu0  ;;  %v2913_v25 = vld [vmem:[%s3651_s9 + $0x30] sm:$0xff]  }
 0x159   : > { %v1361_v33 = vpack.c.bf16 %v1355_v27, %v1355_v27  ;;  %v2771_v34 = vpop.f32.mrb[11].mxu1 }
 0x15a   : > { %v1491_v35 = vsel %vm1489_vm2, %v1360_v31, 0 }
 0x15b   : > { %v1537_v36 = vsel %vm1489_vm2, %v1361_v33, 0  ;;  %2785 = vmatpush3.bf16.msra.mxu0 %v1491_v35  ;;  %v2498_v33 = vld [vmem:[%s3652_s10] ss:$0 sm:$0xff] }
 0x15c   : > { %2791 = vmatpush3.bf16.msra.mxu1 %v1537_v36 }
 0x15d   : > { %2796 = vmatprep.subr.bf16.mxu1 %v3010_v1 }
 0x214   : > { %v1409_v42 = vpop.f32.mrb[12].mxu0 }
 0x215   : > { %v1410_v43 = vadd.f32 %v1409_v42, %v1367_v41  ;;  %v1455_v44 = vpop.f32.mrb[12].mxu1  ;;  %v2776_v45 = vpop.f32.mrb[13].mxu0  ;;  %v2915_v42 = vld [vmem:[%s3655_s13] ss:$8 sps:$4 sm:$0xff]  }
 0x216   : > { %v2782_v46 = vpop.f32.mrb[13].mxu1  ;;  %v1412_v47 = vpop.f32.mrb[14].mxu0  ;;  %v1456_v48 = vadd.f32 %v1455_v44, %v1367_v41  ;;  %v2920_v44 = vld [vmem:[%s3655_s13 + $0x14] ss:$8 sps:$4 sm:$0xff]   ;;  %v2918_v45 = vld [vmem:[%s3655_s13 + $0x10] ss:$8 sps:$4 sm:$0xff]  }
 0x217   : > { %v1458_v49 = vpop.f32.mrb[14].mxu1  ;;  %v2777_v50 = vpop.f32.mrb[15].mxu0  ;;  %v1462_v51 = vsel %vm1461_vm4, %v1410_v43, -inf  ;;  %v2921_v46 = vld [vmem:[%s3655_s13 + $0x20] ss:$8 sps:$4 sm:$0xff]  }
 0x218   : > { %v2783_v52 = vpop.f32.mrb[15].mxu1  ;;  %1463 = vmax.xlane.f32.xlu0 %v1462_v51  ;;  %v1465_v53 = vsel %vm1461_vm4, %v1456_v48, -inf  ;;  %v2926_v51 = vld [vmem:[%s3655_s13 + $0x34] ss:$8 sps:$4 sm:$0xff]  }
 0x219   : > { %v2924_v52 = vld [vmem:[%s3655_s13 + $0x30] ss:$8 sps:$4 sm:$0xff]  }
 0x21c   : > { %1466 = vmax.xlane.f32.xlu0 %v1465_v53  ;;  %v2929_v53 = vld [vmem:[%s3655_s13 + $0x44] ss:$8 sps:$4 sm:$0xff]  }
 0x2a5   : > { %v1464_v54 = vpop.xlane.xlu0 %1463 }
 0x2a6   : > { %v1468_v55 = vsub.f32 %v1410_v43, %v1464_v54  ;;  %v2917_v43 = vld [vmem:[%s3655_s13 + $0x4] ss:$8 sps:$4 sm:$0xff]   ;;  %v2927_v54 = vld [vmem:[%s3655_s13 + $0x40] ss:$8 sps:$4 sm:$0xff]  }
 0x2a7   : > { %1878 = vmatprep.subr.bf16.mxu0 %v2917_v43 }
 0x2a8   : > { %v1470_v56 = vmul.f32 1.442695, %v1468_v55  ;;  %v2932_v55 = vld [vmem:[%s3655_s13 + $0x54] ss:$8 sps:$4 sm:$0xff]  }
 0x2a9   : > { %v1467_v57 = vpop.xlane.xlu0 %1466 }
 0x2aa   : > { %2963 = vpow2.f32 %v1470_v56  ;;  %v1469_v58 = vsub.f32 %v1456_v48, %v1467_v57  ;;  %v2930_v56 = vld [vmem:[%s3655_s13 + $0x50] ss:$8 sps:$4 sm:$0xff]   ;;  %v2935_v57 = vld [vmem:[%s3655_s13 + $0x64] ss:$8 sps:$4 sm:$0xff]  }
 0x2ac   : > { %v1472_v59 = vmul.f32 1.442695, %v1469_v58  ;;  %v2933_v58 = vld [vmem:[%s3655_s13 + $0x60] ss:$8 sps:$4 sm:$0xff]  }
 0x2ae   : > { %2965 = vpow2.f32 %v1472_v59  ;;  %v2938_v59 = vld [vmem:[%s3655_s13 + $0x74] ss:$8 sps:$4 sm:$0xff]  }
 0x2b4   : > { %v2964_v60 = vpop.eup %2963 }
 0x2b5   : > { %v1474_v61 = vsel %vm1461_vm4, %v2964_v60, 0.0 }
 0x2b6   : > { %1475 = vadd.xlane.f32.xlu1 %v1474_v61  ;;  %v3013_v61 = vmov 0  }
 0x2b8   : > { %v2966_v62 = vpop.eup %2965 }
 0x2b9   : > { %v1477_v63 = vsel %vm1461_vm4, %v2966_v62, 0.0 }
 0x2ba   : > { %1478 = vadd.xlane.f32.xlu1 %v1477_v63 }
 0x343   : > { %v1476_v0 = vpop.xlane.xlu1 %1475 }
 0x344   : > { %2967 = vrcp.f32 %v1476_v0 }
 0x347   : > { %v1479_v2 = vpop.xlane.xlu1 %1478 }
 0x348   : > { %2969 = vrcp.f32 %v1479_v2 }
 0x34e   : > { %v2968_v3 = vpop.eup %2967 }
 0x34f   : > { %v1481_v4 = vmul.f32 %v2968_v3, %v2964_v60  ;;  %v2936_v60 = vld [vmem:[%s3655_s13 + $0x70] ss:$8 sps:$4 sm:$0xff]   ;;  %v2499_v3 = vld [vmem:[%s3653_s11] ss:$0 sm:$0xff] }
 0x351   : > { %v1484_v5 = vpack.c.bf16 %v1481_v4, %v1481_v4 }
 0x352   : > { %v2970_v6 = vpop.eup %2969 }
 0x353   : > { %v1483_v7 = vmul.f32 %v2970_v6, %v2966_v62  ;;  %2787 = vmatmul.mubr.msk.bf16.vlgmr.msra.gmra.mrb[16].mxu0 %vm1461_vm4, %v1484_v5  ;;  %v2500_v5 = vld [vmem:[%s3654_s12] ss:$0 sm:$0xff] }
 0x354   : > { %1879 = vmatpush1.bf16.msra.mxu0 %v2915_v42  ;;  %1910 = vmatprep.mubr.bf16.mxu0 %v3013_v61 }
 0x355   : > { %v1485_v9 = vpack.c.bf16 %v1483_v7, %v1483_v7  ;;  %1880 = vmatprep.subr.bf16.mxu0 %v2920_v44 }
 0x357   : > { %2793 = vmatmul.mubr.msk.bf16.vlgmr.msra.gmra.mrb[16].mxu1 %vm1461_vm4, %v1485_v9  ;;  %v2939_v9 = vld [vmem:[%s3657_s15 + $0x40] sm:$0xff]  }
 0x358   : > { %2797 = vmatpush3.bf16.msra.mxu1 %v2907_v8  ;;  %2804 = vmatprep.mubr.msk.bf16.mxu1 %vm3011_vm0, %v3010_v1 }
 0x359   : > { %2798 = vmatprep.subr.bf16.mxu1 %v3010_v1  ;;  %1881 = vmatpush1.bf16.msra.mxu0 %v2918_v45 }
 0x35c   : > { %2799 = vmatpush3.bf16.msra.mxu1 %v2908_v10  ;;  %v2940_v10 = vld [vmem:[%s3657_s15] sm:$0xff]  }
 0x35d   : > { %2800 = vmatprep.subr.bf16.mxu1 %v3010_v1 }
 0x360   : > { %2801 = vmatpush3.bf16.msra.mxu1 %v2909_v11  ;;  %v2941_v11 = vld [vmem:[%s3657_s15 + $0x48] sm:$0xff]  }
 0x361   : > { %2802 = vmatprep.subr.bf16.mxu1 %v3010_v1 }
 0x364   : > { %2803 = vmatpush3.bf16.msra.mxu1 %v2910_v12  ;;  %v2942_v12 = vld [vmem:[%s3657_s15 + $0x8] sm:$0xff]  }
 0x365   : > { %2808 = vmatprep.subr.bf16.mxu1 %v3010_v1 }
 0x426   : > { %v1527_v13 = vpop.f32.mrb[16].mxu0 }
 0x427   : > { %v1579_v15 = vpack.c.bf16 %v1527_v13, %v1527_v13  ;;  %v2788_v17 = vpop.f32.mrb[17].mxu0  ;;  %v2943_v13 = vld [vmem:[%s3657_s15 + $0x50] sm:$0xff]  }
 0x428   : > { %v1530_v18 = vpop.f32.mrb[18].mxu0  ;;  %v2946_v17 = vld [vmem:[%s3657_s15 + $0x18] sm:$0xff]  }
 0x429   : > { %v2789_v19 = vpop.f32.mrb[19].mxu0  ;;  %2805 = vmatmul.mubr.msk.bf16.vlgmr.msra.gmra.mrb[20].mxu1 %vm1368_vm1, %v1579_v15  ;;  %v2945_v15 = vld [vmem:[%s3657_s15 + $0x58] sm:$0xff]   ;;  %v2947_v18 = vld [vmem:[%s3657_s15 + $0x60] sm:$0xff]  }
 0x42a   : > { %2809 = vmatpush3.bf16.msra.mxu1 %v2911_v14  ;;  %v1573_v20 = vpop.f32.mrb[16].mxu1  ;;  %2816 = vmatprep.mubr.msk.bf16.mxu1 %vm3011_vm0, %v3010_v1  ;;  %v2944_v14 = vld [vmem:[%s3657_s15 + $0x10] sm:$0xff]   ;;  %v2948_v19 = vld [vmem:[%s3657_s15 + $0x20] sm:$0xff]  }
 0x42b   : > { %v2794_v22 = vpop.f32.mrb[17].mxu1  ;;  %2810 = vmatprep.subr.bf16.mxu1 %v3010_v1  ;;  %v1580_v27 = vpack.c.bf16 %v1573_v20, %v1573_v20  ;;  %v2949_v20 = vld [vmem:[%s3657_s15 + $0x68] sm:$0xff]  }
 0x42c   : > { %v1576_v23 = vpop.f32.mrb[18].mxu1  ;;  %v2951_v22 = vld [vmem:[%s3657_s15 + $0x70] sm:$0xff]  }
 0x42d   : > { %v2795_v24 = vpop.f32.mrb[19].mxu1  ;;  %v2952_v23 = vld [vmem:[%s3657_s15 + $0x30] sm:$0xff]  }
 0x42e   : > { %2811 = vmatpush3.bf16.msra.mxu1 %v2912_v21  ;;  %v2950_v21 = vld [vmem:[%s3657_s15 + $0x28] sm:$0xff]   ;;  %v2953_v24 = vld [vmem:[%s3657_s15 + $0x78] sm:$0xff]  }
 0x42f   : > { %2812 = vmatprep.subr.bf16.mxu1 %v3010_v1 }
 0x432   : > { %2813 = vmatpush3.bf16.msra.mxu1 %v2913_v25  ;;  %v2954_v25 = vld [vmem:[%s3657_s15 + $0x38] sm:$0xff]  }
 0x433   : > { %2814 = vmatprep.subr.bf16.mxu1 %v3010_v1 }
 0x436   : > { %2815 = vmatpush3.bf16.msra.mxu1 %v2914_v26  ;;  %v1789_v26 = vshrl.u32 %v1362_v37, 7 }
 0x437   : > { %2621 = vmatprep.subr.bf16.mxu1 %v2939_v9 }
 0x439   : > { %2817 = vmatmul.mubr.msk.bf16.vlgmr.msra.gmra.mrb[24].mxu1 %vm1368_vm1, %v1580_v27  ;;  %v1790_v27 = vsub.s32 0, %v1789_v26 }
 0x43a   : > { %2622 = vmatpush3.bf16.msra.mxu1 %v2940_v10 }
 0x43b   : > { %2623 = vmatprep.subr.bf16.mxu1 %v2941_v11  ;;  %v2958_v11 = vld [vmem:[%s3661_s19 + $0x18] sm:$0xff]  }
 0x43e   : > { %2624 = vmatpush3.bf16.msra.mxu1 %v2942_v12  ;;  %v2959_v12 = vld [vmem:[%s3661_s19 + $0x20] sm:$0xff]  }
 0x43f   : > { %2625 = vmatprep.subr.bf16.mxu1 %v2943_v13  ;;  %v2960_v13 = vld [vmem:[%s3661_s19 + $0x28] sm:$0xff]  }
 0x442   : > { %2626 = vmatpush3.bf16.msra.mxu1 %v2944_v14  ;;  %v2961_v14 = vld [vmem:[%s3661_s19 + $0x30] sm:$0xff]  }
 0x443   : > { %2627 = vmatprep.subr.bf16.mxu1 %v2945_v15  ;;  %v2962_v15 = vld [vmem:[%s3661_s19 + $0x38] sm:$0xff]  }
 0x446   : > { %2628 = vmatpush3.bf16.msra.mxu1 %v2946_v17  ;;  %v3014_v17 = vmov 1  }
 0x447   : > { %2629 = vmatprep.subr.bf16.mxu1 %v2947_v18  ;;  %2856 = vset.pattern.permute.xlu0 %v3014_v17 }
 0x44a   : > { %2630 = vmatpush3.bf16.msra.mxu1 %v2948_v19 }
 0x44b   : > { %2631 = vmatprep.subr.bf16.mxu1 %v2949_v20 }
 0x44e   : > { %2632 = vmatpush3.bf16.msra.mxu1 %v2950_v21 }
 0x44f   : > { %2633 = vmatprep.subr.bf16.mxu1 %v2951_v22 }
 0x452   : > { %2634 = vmatpush3.bf16.msra.mxu1 %v2952_v23  ;;  %v2534_v23 = vld [vmem:[%s3659_s17] ss:$0 sm:$0xff] }
 0x453   : > { %2635 = vmatprep.subr.bf16.mxu1 %v2953_v24 }
 0x456   : > { %2636 = vmatpush3.bf16.msra.mxu1 %v2954_v25  ;;  %v2535_v25 = vld [vmem:[%s3660_s18] ss:$0 sm:$0xff] }
 0x4fc   : > { %v1658_v28 = vpop.f32.mrb[20].mxu1 }
 0x4fd   : > { %v2806_v29 = vpop.f32.mrb[21].mxu1 }
 0x4fe   : > { %v1661_v30 = vpop.f32.mrb[22].mxu1  ;;  %v1794_v29 = vsub.s32 1, %v1789_v26 }
 0x4ff   : > { %v2807_v31 = vpop.f32.mrb[23].mxu1 }
 0x50c   : > { %v1725_v32 = vpop.f32.mrb[24].mxu1 }
 0x50d   : > { %v1731_v34 = vadd.f32 %v1725_v32, %v1658_v28  ;;  %v2818_v35 = vpop.f32.mrb[25].mxu1  ;;  %v1786_v28 = vld [vmem:[%s3656_s14] sm:$0x3] }
 0x50e   : > { %v1728_v36 = vpop.f32.mrb[26].mxu1  ;;  %v1791_v30 = vrot.slane %v1786_v28, %v1790_v27  ;;  %v1795_v31 = vrot.slane %v1786_v28, %v1794_v29 }
 0x50f   : > { %v1739_v39 = vadd.f32 %v2498_v33, %v1731_v34  ;;  %v2819_v40 = vpop.f32.mrb[27].mxu1 }
 0x511   : > { %v1740_v41 = vadd.f32 %v1739_v39, %v3219_v16  ;;  %v2923_v16 = vld [vmem:[%s3655_s13 + $0x24] ss:$8 sps:$4 sm:$0xff]  }
 0x512   : > { %1882 = vmatprep.subr.bf16.mxu0 %v2923_v16 }
 0x513   : > { %1741 = vadd.xlane.f32.xlu0 %v1740_v41  ;;  %1883 = vmatpush1.bf16.msra.mxu0 %v2921_v46 }
 0x514   : > { %1884 = vmatprep.subr.bf16.mxu0 %v2926_v51 }
 0x517   : > { %1885 = vmatpush1.bf16.msra.mxu0 %v2924_v52 }
 0x518   : > { %1886 = vmatprep.subr.bf16.mxu0 %v2929_v53 }
 0x51b   : > { %1887 = vmatpush1.bf16.msra.mxu0 %v2927_v54 }
 0x51c   : > { %1888 = vmatprep.subr.bf16.mxu0 %v2932_v55 }
 0x51f   : > { %1889 = vmatpush1.bf16.msra.mxu0 %v2930_v56 }
 0x520   : > { %1890 = vmatprep.subr.bf16.mxu0 %v2935_v57 }
 0x523   : > { %1891 = vmatpush1.bf16.msra.mxu0 %v2933_v58 }
 0x524   : > { %1892 = vmatprep.subr.bf16.mxu0 %v2938_v59  ;;  %v2517_v59 = vld [vmem:[%s3684_s25] ss:$0 sm:$0xff]  ;;  %s677_s25 = scalar_lea.vmem %s3685_s1, %s3202_s4  ;;  %s681_s1 = scalar_lea.vmem %s3663_s21, %s3202_s4 }
 0x525   : > { %v2256_v18 = vld [vmem:[%s677_s25] sm:$0xff]  ;;  %s3015_s25 = smov 2   ;;  %s3016_s4 = smov 126  }
 0x527   : > { %1893 = vmatpush1.bf16.msra.mxu0 %v2936_v60 }
 0x528   : > { %2820 = vmatprep.subr.bf16.mxu0 %v3010_v1 }
 0x5a0   : > { %v1742_v47 = vpop.xlane.xlu0 %1741 }
 0x5a1   : > { %v1744_v48 = vmul.f32 0.0078125, %v1742_v47 }
 0x5a3   : > { %v1745_v49 = vsub.f32 %v1740_v41, %v1744_v48 }
 0x5a5   : > { %v1746_v50 = vmul.f32 %v1745_v49, %v1745_v49 }
 0x5a7   : > { %1747 = vadd.xlane.f32.xlu1 %v1746_v50 }
 0x634   : > { %v1748_v62 = vpop.xlane.xlu1 %1747 }
 0x635   : > { %v1749_v63 = vmul.f32 0.0078125, %v1748_v62 }
 0x637   : > { %v1750_v0 = vadd.f32 1e-12, %v1749_v63 }
 0x639   : > { %2971 = vrsqrt.f32 %v1750_v0 }
 0x643   : > { %v2972_v2 = vpop.eup %2971 }
 0x644   : > { %v1752_v4 = vmul.f32 %v2972_v2, %v1745_v49 }
 0x646   : > { %v1760_v6 = vmul.f32 %v2499_v3, %v1752_v4  ;;  %v2955_v4 = vld [vmem:[%s3661_s19] sm:$0xff]  }
 0x648   : > { %v3515_v7 = vadd.f32 %v2500_v5, %v1760_v6  ;;  %v2956_v5 = vld [vmem:[%s3661_s19 + $0x8] sm:$0xff]  }
 0x64a   : > { %v1769_v8 = vpack.c.bf16 %v3515_v7, %v3515_v7 }
 0x64c   : > { %1911 = vmatmul.mubr.bf16.vlgmr.msra.gmra.mrb[20].mxu0 %v1769_v8 }
 0x64d   : > { %2836 = vmatprep.mubr.msk.bf16.mxu0 %vm3011_vm0, %v3010_v1  ;;  %2821 = vmatpush3.bf16.msra.mxu0 %v2955_v4 }
 0x64e   : > { %2822 = vmatprep.subr.bf16.mxu0 %v3010_v1 }
 0x651   : > { %2823 = vmatpush3.bf16.msra.mxu0 %v2956_v5 }
 0x652   : > { %2824 = vmatprep.subr.bf16.mxu0 %v3010_v1 }
 0x71f   : > { %v1912_v32 = vpop.f32.mrb[20].mxu0 }
 0x720   : > { %v1913_v33 = vadd.f32 %v1912_v32, %v1791_v30  ;;  %v1914_v34 = vpop.f32.mrb[21].mxu0 }
 0x721   : > { %v1915_v35 = vadd.f32 %v1914_v34, %v1795_v31  ;;  %v1916_v36 = vpop.f32.mrb[22].mxu0 }
 0x722   : > { %v1919_v39 = vmul.f32 %v1913_v33, %v1913_v33  ;;  %v1917_v40 = vpop.f32.mrb[23].mxu0 }
 0x723   : > { %v1920_v41 = vmul.f32 %v1915_v35, %v1915_v35 }
 0x724   : > { %v1921_v42 = vmul.f32 %v1919_v39, %v1913_v33 }
 0x725   : > { %v1922_v43 = vmul.f32 %v1920_v41, %v1915_v35 }
 0x726   : > { %v1923_v44 = vmul.f32 0.044715, %v1921_v42 }
 0x727   : > { %v1924_v37 = vmul.f32 0.044715, %v1922_v43 }
 0x728   : > { %v1925_v45 = vadd.f32 %v1923_v44, %v1913_v33 }
 0x729   : > { %v1926_v16 = vadd.f32 %v1924_v37, %v1915_v35 }
 0x72a   : > { %v1927_v46 = vmul.f32 0.7978846, %v1925_v45 }
 0x72b   : > { %v1928_v47 = vmul.f32 0.7978846, %v1926_v16 }
 0x72c   : > { %2973 = vtanh.f32 %v1927_v46 }
 0x72d   : > { %2975 = vtanh.f32 %v1928_v47 }
 0x736   : > { %v2974_v48 = vpop.eup %2973 }
 0x737   : > { %v2976_v49 = vpop.eup %2975  ;;  %v1931_v50 = vadd.f32 1.0, %v2974_v48 }
 0x738   : > { %v1932_v51 = vadd.f32 1.0, %v2976_v49 }
 0x739   : > { %v1933_v52 = vmul.f32 0.5, %v1931_v50 }
 0x73a   : > { %v1934_v53 = vmul.f32 0.5, %v1932_v51 }
 0x73b   : > { %v1935_v54 = vmul.f32 %v1933_v52, %v1913_v33 }
 0x73c   : > { %v1936_v55 = vmul.f32 %v1934_v53, %v1915_v35 }
 0x73d   : > { %v1937_v57 = vpack.c.bf16 %v1935_v54, %v1935_v54 }
 0x73e   : > { %v1938_v56 = vpack.c.bf16 %v1936_v55, %v1936_v55 }
 0x740   : > { %2106 = vmatprep.mubr.bf16.mxu1 %v1938_v56 }
 0x741   : > { %2107 = vmatmul.mubr.bf16.vlgmr.msra.gmra.mrb[28].mxu1 %v1937_v57 }
 0x814   : > { %v2637_v58 = vpop.f32.mrb[28].mxu1 }
 0x815   : > { %v2638_v60 = vpop.f32.mrb[29].mxu1 }
 0x816   : > { %v2639_v62 = vadd.f32 %v2638_v60, %v2637_v58  ;;  %v2640_v63 = vpop.f32.mrb[30].mxu1 }
 0x817   : > { %v2641_v0 = vpop.f32.mrb[31].mxu1 }
 0x818   : > { %v2109_v2 = vadd.f32 %v2639_v62, %v2517_v59 }
 0x81a   : > { %v2114_v3 = vadd.f32 %v2109_v2, %v3515_v7  ;;  %v2957_v7 = vld [vmem:[%s3661_s19 + $0x10] sm:$0xff]  }
 0x81b   : > { %2825 = vmatpush3.bf16.msra.mxu0 %v2957_v7 }
 0x81c   : > { %2115 = vadd.xlane.f32.xlu0 %v2114_v3  ;;  %2826 = vmatprep.subr.bf16.mxu0 %v3010_v1 }
 0x81f   : > { %2827 = vmatpush3.bf16.msra.mxu0 %v2958_v11 }
 0x820   : > { %2828 = vmatprep.subr.bf16.mxu0 %v3010_v1 }
 0x823   : > { %2829 = vmatpush3.bf16.msra.mxu0 %v2959_v12 }
 0x824   : > { %2830 = vmatprep.subr.bf16.mxu0 %v3010_v1 }
 0x827   : > { %2831 = vmatpush3.bf16.msra.mxu0 %v2960_v13 }
 0x828   : > { %2832 = vmatprep.subr.bf16.mxu0 %v3010_v1 }
 0x82b   : > { %2833 = vmatpush3.bf16.msra.mxu0 %v2961_v14 }
 0x82c   : > { %2834 = vmatprep.subr.bf16.mxu0 %v3010_v1 }
 0x82f   : > { %2835 = vmatpush3.bf16.msra.mxu0 %v2962_v15 }
 0x832   : > { %2305 = vperm.xlu0 %2856, %v2256_v18  }
 0x836   : > { %2857 = vset.pattern.permute.xlu0 %v3013_v61  ;;  %v2536_v61 = vld [vmem:[%s3662_s20] ss:$0 sm:$0xff] }
 0x8a9   : > { %v2116_v6 = vpop.xlane.xlu0 %2115 }
 0x8aa   : > { %v2117_v8 = vmul.f32 0.0078125, %v2116_v6 }
 0x8ac   : > { %v2118_v9 = vsub.f32 %v2114_v3, %v2117_v8 }
 0x8ae   : > { %v2119_v10 = vmul.f32 %v2118_v9, %v2118_v9 }
 0x8b0   : > { %2120 = vadd.xlane.f32.xlu1 %v2119_v10 }
 0x8b1   : > { %v2306_v35 = vpop.permute.xlu0 %2305 }
 0x8b2   : > { %vm2307_vm7 = vcmp.eq.s32.totalorder %v3409_v38, %v2306_v35 }
 0x8b3   : > { %v2546_v36 = vsel %vm2307_vm7, 1.0, %v3010_v1 }
 0x93d   : > { %v2121_v19 = vpop.xlane.xlu1 %2120 }
 0x93e   : > { %v2122_v20 = vmul.f32 0.0078125, %v2121_v19 }
 0x940   : > { %v2123_v21 = vadd.f32 1e-12, %v2122_v20 }
 0x942   : > { %2977 = vrsqrt.f32 %v2123_v21 }
 0x94c   : > { %v2978_v22 = vpop.eup %2977 }
 0x94d   : > { %v2125_v24 = vmul.f32 %v2978_v22, %v2118_v9 }
 0x94f   : > { %v2133_v26 = vmul.f32 %v2534_v23, %v2125_v24 }
 0x951   : > { %v2141_v27 = vadd.f32 %v2535_v25, %v2133_v26 }
 0x953   : > { %v2142_v28 = vpack.c.bf16 %v2141_v27, %v2141_v27 }
 0x955   : > { %2837 = vmatmul.mubr.bf16.vlgmr.msra.gmra.mrb[24].mxu0 %v2142_v28 }
 0xa28   : > { %v2248_v29 = vpop.f32.mrb[24].mxu0 }
 0xa29   : > { %v2249_v30 = vadd.f32 %v2536_v61, %v2248_v29  ;;  %v2838_v31 = vpop.f32.mrb[25].mxu0 }
 0xa2a   : > { %v2251_v32 = vpop.f32.mrb[26].mxu0 }
 0xa2b   : > { %2255 = vst.msk [vmem:[%s681_s1] sm:$0xff] %vm2254_vm5, %v2249_v30  ;;  %v2839_v33 = vpop.f32.mrb[27].mxu0  ;;  %v2288_v34 = vsel %vm2287_vm6, %v2249_v30, -inf  ;;  %v2258_v39 = vsel %vm2257_vm8, %v2249_v30, -inf }
 0xa2c   : > { %2289 = vmax.xlane.f32.xlu1 %v2288_v34 }
 0xa3d   : > { %2311 = vrot.lane.b32.xlu1 %v2546_v36, %s3015_s25 }
 0xa61   : > { %2259 = vmax.xlane.f32.xlu1 %v2258_v39 }
 0xab9   : > { %v2290_v40 = vpop.xlane.xlu1 %2289 }
 0xaba   : > { %v2291_v41 = vsub.f32 %v2249_v30, %v2290_v40 }
 0xabc   : > { %v2292_v42 = vmul.f32 1.442695, %v2291_v41 }
 0xabd   : > { %v2312_v44 = vpop.permute.xlu1 %2311 }
 0xabe   : > { %2979 = vpow2.f32 %v2292_v42  ;;  %v2314_v37 = vmul.f32 %v2312_v44, %v2249_v30 }
 0xac8   : > { %v2980_v43 = vpop.eup %2979 }
 0xac9   : > { %2295 = vrot.lane.b32.xlu0 %v2980_v43, %s3016_s4 }
 0xacd   : > { %2271 = vperm.xlu0 %2857, %v2256_v18  }
 0xad1   : > { %2316 = vrot.lane.b32.xlu0 %v2314_v37, %s3016_s4 }
 0xad2   : > { %2858 = vset.pattern.permute.xlu0 %v3014_v17 }
 0xaee   : > { %v2260_v45 = vpop.xlane.xlu1 %2259 }
 0xaef   : > { %v2261_v16 = vsub.f32 %v2249_v30, %v2260_v45 }
 0xaf1   : > { %v2262_v46 = vmul.f32 1.442695, %v2261_v16 }
 0xaf3   : > { %2981 = vpow2.f32 %v2262_v46 }
 0xafd   : > { %v2982_v47 = vpop.eup %2981 }
 0xafe   : > { %v2264_v48 = vsel %vm2257_vm8, %v2982_v47, 0.0 }
 0xaff   : > { %2265 = vadd.xlane.f32.xlu1 %v2264_v48 }
 0xb3b   : > { %v2296_v49 = vpop.permute.xlu0 %2295 }
 0xb3c   : > { %v2298_v50 = vsel %vm2257_vm8, %v2296_v49, 0.0 }
 0xb3d   : > { %2299 = vadd.xlane.f32.xlu0 %v2298_v50 }
 0xb4c   : > { %v2272_v51 = vpop.permute.xlu0 %2271 }
 0xb4d   : > { %vm2273_vm9 = vcmp.eq.s32.totalorder %v3409_v38, %v2272_v51 }
 0xb4e   : > { %v2545_v52 = vsel %vm2273_vm9, 1.0, %v3010_v1 }
 0xb4f   : > { %v2276_v53 = vmul.f32 %v2545_v52, %v2249_v30 }
 0xb50   : > { %v2317_v55 = vpop.permute.xlu0 %2316 }
 0xb51   : > { %v2277_v54 = vsel %vm2257_vm8, %v2276_v53, 0.0  ;;  %v2319_v56 = vsel %vm2257_vm8, %v2317_v55, 0.0 }
 0xb52   : > { %2278 = vadd.xlane.f32.xlu1 %v2277_v54 }
 0xb56   : > { %2320 = vadd.xlane.f32.xlu1 %v2319_v56 }
 0xb8c   : > { %v2266_v57 = vpop.xlane.xlu1 %2265 }
 0xb8d   : > { %2983 = vlog2.f32 %v2266_v57 }
 0xb97   : > { %v2984_v59 = vpop.eup %2983 }
 0xb98   : > { %v2268_v60 = vmul.f32 0.6931472, %v2984_v59 }
 0xb9a   : > { %v2269_v0 = vadd.f32 %v2268_v60, %v2260_v45 }
 0xbca   : > { %v2300_v58 = vpop.xlane.xlu0 %2299 }
 0xbcb   : > { %2985 = vlog2.f32 %v2300_v58 }
 0xbd5   : > { %v2986_v62 = vpop.eup %2985 }
 0xbd6   : > { %v2302_v63 = vmul.f32 0.6931472, %v2986_v62 }
 0xbd8   : > { %v2303_v3 = vadd.f32 %v2302_v63, %v2290_v40 }
 0xbdf   : > { %v2279_v38 = vpop.xlane.xlu1 %2278 }
 0xbe0   : > { %v2280_v2 = vsub.f32 %v2269_v0, %v2279_v38 }
 0xbe2   : > { %v2281_v1 = vrot.slane %v2280_v2, 4 }
 0xbe3   : > { %v2321_v4 = vpop.xlane.xlu1 %2320 }
 0xbe4   : > { %v2282_v5 = vadd.f32 %v2281_v1, %v2280_v2  ;;  %v2322_v6 = vsub.f32 %v2303_v3, %v2321_v4 }
 0xbe6   : > { %v2283_v8 = vrot.slane %v2282_v5, 2  ;;  %v2323_v9 = vrot.slane %v2322_v6, 4 }
 0xbe8   : > { %v2284_v10 = vadd.f32 %v2283_v8, %v2282_v5  ;;  %v2324_v7 = vadd.f32 %v2323_v9, %v2322_v6 }
 0xbea   : > { %v2325_v11 = vrot.slane %v2324_v7, 2  ;;  %v2285_v12 = vrot.slane %v2284_v10, 1 }
 0xbec   : > { %v2326_v13 = vadd.f32 %v2325_v11, %v2324_v7  ;;  %v2286_v15 = vadd.f32 %v2285_v12, %v2284_v10 }
 0xbee   : > { %v2327_v14 = vrot.slane %v2326_v13, 1 }
 0xbf0   : > { %v2328_v17 = vadd.f32 %v2327_v14, %v2326_v13 }
 0xbf2   : > { %v2329_v18 = vadd.f32 %v2328_v17, %v2286_v15 }
 0xbf4   : > { %2331 = vst.msk [vmem:[%s684_s3] sm:$0x1] %vm2330_vm10, %v2329_v18 }
 0xbf5 PF: > { %s39_s0 = sadd.s32 1, %s3007_s0  }
 0xbf6   : > { %p36_p9 = scmp.ge.s32.totalorder %s39_s0, 4  }
 0xbf8   :  { %38 = sbr.rel (!%p36_p9) target bundleno = 23 (0x17), region = 145 }

</bundles_post_ra>
